<compile_context>
chip_gen: v7x
topology: tpu7x:2x2x1
jax: 0.10.0
libtpu: 0.0.40
codegen_flags: <defaults>
</compile_context>

<pallas_src>
from functools import partial

import jax
import jax.numpy as jnp
from jax.experimental import pallas as pl
from jax.experimental.pallas import tpu as pltpu

LANE = 128


def _round_up(x, m):
    return (x + m - 1) // m * m


def _pick_band_oh(OH, OW, target_rows=512):
    """Largest proper divisor of OH whose band (band_oh*OW rows) is <= target_rows
    and a multiple of 8 (keeps the y block sublane-aligned). Falls back to OH
    (one band == whole image) when no proper divisor qualifies."""
    best = OH
    for d in range(1, OH):
        if OH % d == 0 and (d * OW) % 8 == 0 and d * OW <= target_rows:
            best = d
    return best


def _pick_row_tile(M, target=1024):
    """Row tile for the normalize+PReLU pass: large (amortize ~0.35us/step
    overhead), but split small problems in two so both v7x cores get work."""
    if M >= 2 * target:
        return target
    return max(8, _round_up((M + 1) // 2, 8))


# ---------------- kernel 1: band-tiled conv (in-VMEM im2col, one deep-K dot)
# ----------------           + per-band BN partial statistics ----------------

def _conv_stats_kernel(x_ref, w_ref, y_ref, sum_ref, ssq_ref, *,
                       KH, KW, OW, S, band_oh):
    # x_ref:   (1, Hp, Wp, Cin)        bf16  whole zero-padded image (block index
    #                                        constant across the band axis -> stays
    #                                        VMEM-resident, DMA'd once per image)
    # w_ref:   (KH*KW*Cin, Cout_p)     bf16  im2col-ordered weights
    # y_ref:   (1, band_oh*OW, Cout_p) bf16  conv output band (lane-dense)
    # sum_ref/ssq_ref: (1, 1, 8, Cout_p) f32 per-band sublane-partial BN stats
    cin = x_ref.shape[3]
    cout_p = w_ref.shape[1]
    rows = band_oh * OW
    b = pl.program_id(1)
    row0 = b * (band_oh * S)                       # first padded-input row of band

    # In-VMEM im2col: build one (rows, KH*KW*Cin) patch and issue a single MXU
    # dot with K = KH*KW*Cin instead of KH*KW shallow K=Cin dots.
    taps = []
    for kh in range(KH):
        for kw in range(KW):
            if S == 1:
                xs = x_ref[0, pl.ds(row0 + kh, band_oh), kw:kw + OW, :]
            else:
                xs = x_ref[0, pl.ds(row0 + kh, band_oh, S), pl.ds(kw, OW, S), :]
            taps.append(xs.reshape(rows, cin))
    patch = jnp.concatenate(taps, axis=-1)          # (rows, KH*KW*Cin) bf16, VMEM
    acc = jnp.dot(patch, w_ref[...], preferred_element_type=jnp.float32)

    y_ref[0] = acc.astype(y_ref.dtype)              # bf16 store: half the HBM write

    # BN partial stats from the f32 accumulator, kept as 8 sublane-partials
    # (sublane-major reshape is layout-cheap; only VPU adds, no full reduce).
    if rows % 8 == 0:
        sum_ref[0, 0] = acc.reshape(rows // 8, 8, cout_p).sum(axis=0)
        ssq_ref[0, 0] = (acc * acc).reshape(rows // 8, 8, cout_p).sum(axis=0)
    else:
        pad7 = jnp.zeros((7, cout_p), jnp.float32)
        sum_ref[0, 0] = jnp.concatenate([acc.sum(0, keepdims=True), pad7], axis=0)
        ssq_ref[0, 0] = jnp.concatenate([(acc * acc).sum(0, keepdims=True), pad7],
                                        axis=0)


def _conv_stats(x_pad, wmat, OH, OW, KH, KW, S, cout_p, band_oh):
    N, Hp, Wp, Cin = x_pad.shape
    n_bands = OH // band_oh
    rows = band_oh * OW
    return pl.pallas_call(
        partial(_conv_stats_kernel, KH=KH, KW=KW, OW=OW, S=S, band_oh=band_oh),
        out_shape=(jax.ShapeDtypeStruct((N, OH * OW, cout_p), jnp.bfloat16),
                   jax.ShapeDtypeStruct((N, n_bands, 8, cout_p), jnp.float32),
                   jax.ShapeDtypeStruct((N, n_bands, 8, cout_p), jnp.float32)),
        grid_spec=pltpu.PrefetchScalarGridSpec(
            num_scalar_prefetch=0,
            grid=(N, n_bands),
            in_specs=[
                # Whole padded image per n; the index does not change across the
                # band axis so it is not re-fetched per band.
                # TODO(synk): for very large Hp*Wp*Cin switch to a halo'd row-band
                # input block (pl.Element on H or manual make_async_copy) so the
                # input footprint is bounded too.
                pl.BlockSpec((1, Hp, Wp, Cin), lambda n, b: (n, 0, 0, 0)),
                pl.BlockSpec((KH * KW * Cin, cout_p), lambda n, b: (0, 0)),
            ],
            out_specs=(
                pl.BlockSpec((1, rows, cout_p), lambda n, b: (n, b, 0)),
                pl.BlockSpec((1, 1, 8, cout_p), lambda n, b: (n, b, 0, 0)),
                pl.BlockSpec((1, 1, 8, cout_p), lambda n, b: (n, b, 0, 0)),
            ),
        ),
        compiler_params=pltpu.CompilerParams(
            dimension_semantics=("parallel", "parallel")),
    )(x_pad, wmat)


# ---------------- kernel 2: tiled affine-normalize + PReLU (bf16 in, f32 out) ---

def _bn_prelu_kernel(y_ref, sc_ref, sh_ref, al_ref, o_ref, *, linear):
    z = y_ref[...].astype(jnp.float32) * sc_ref[...] + sh_ref[...]
    if linear:
        o_ref[...] = z
    else:
        o_ref[...] = jnp.where(z >= 0, z, al_ref[...] * z)


def _bn_prelu(y2, scale, shift, alpha, tm, linear):
    M, cout_p = y2.shape
    return pl.pallas_call(
        partial(_bn_prelu_kernel, linear=linear),
        out_shape=jax.ShapeDtypeStruct((M, cout_p), jnp.float32),
        grid_spec=pltpu.PrefetchScalarGridSpec(
            num_scalar_prefetch=0,
            grid=(pl.cdiv(M, tm),),   # trailing partial block is masked by Pallas
            in_specs=[pl.BlockSpec((tm, cout_p), lambda i: (i, 0)),
                      pl.BlockSpec((1, cout_p), lambda i: (0, 0)),
                      pl.BlockSpec((1, cout_p), lambda i: (0, 0)),
                      pl.BlockSpec((1, cout_p), lambda i: (0, 0))],
            out_specs=pl.BlockSpec((tm, cout_p), lambda i: (i, 0)),
        ),
        compiler_params=pltpu.CompilerParams(dimension_semantics=("parallel",)),
    )(y2, scale, shift, alpha)


# ---------------- wrapper ----------------

def conv_block(x_nchw, weight_oihw, gamma, beta, alpha, *,
               stride, padding, eps=1e-5, linear=False,
               conv_band_rows=512, bn_row_tile=1024):
    """Forward pass of ConvBlock (dw=False). Input/output are NCHW, float32."""
    N, Cin, H, W = x_nchw.shape
    Cout, Cin_w, KH, KW = weight_oihw.shape
    assert Cin_w == Cin  # TODO(synk): depthwise (dw=True, groups=inp) path not implemented
    OH = (H + 2 * padding - KH) // stride + 1
    OW = (W + 2 * padding - KW) // stride + 1
    cout_p = _round_up(Cout, LANE)
    M = N * OH * OW

    # Input prep: NCHW -> NHWC, zero-pad spatially, bf16 matmul operand.
    # TODO(synk): if the surrounding model is kept NHWC end-to-end these wrapper
    # transposes (and the final one below) disappear; the zero-padding could
    # also be folded into kernel 1 via a masked/halo'd input band.
    x = jnp.transpose(x_nchw, (0, 2, 3, 1)).astype(jnp.bfloat16)
    x_pad = jnp.pad(x, ((0, 0), (padding, padding), (padding, padding), (0, 0)))

    # Weight OIHW -> im2col-ordered (KH*KW*Cin, Cout_p), Cout zero-padded, bf16.
    wmat = jnp.transpose(weight_oihw, (2, 3, 1, 0)).reshape(KH * KW * Cin, Cout)
    wmat = jnp.pad(wmat, ((0, 0), (0, cout_p - Cout))).astype(jnp.bfloat16)

    # kernel 1: band-tiled conv (single deep-K dot) + per-band BN partial sums.
    band_oh = _pick_band_oh(OH, OW, conv_band_rows)
    y, psum, pssq = _conv_stats(x_pad, wmat, OH, OW, KH, KW, stride, cout_p, band_oh)

    # Tiny stat combine (n_bands*8 x cout_p; negligible).  Biased variance ==
    # PyTorch training-mode BN normalization.
    # TODO(synk): E[x^2]-E[x]^2 in f32 can cancel for very large M / strongly
    # offset activations; use a shifted/compensated combine if that matters.
    cnt = jnp.float32(M)
    mean = psum.sum(axis=(0, 1, 2)) / cnt
    var = jnp.maximum(pssq.sum(axis=(0, 1, 2)) / cnt - mean * mean, 0.0)
    gamma_p = jnp.pad(gamma.astype(jnp.float32), (0, cout_p - Cout))
    beta_p = jnp.pad(beta.astype(jnp.float32), (0, cout_p - Cout))
    alpha_p = jnp.pad(alpha.astype(jnp.float32), (0, cout_p - Cout))
    scale = gamma_p * jax.lax.rsqrt(var + eps)
    shift = beta_p - mean * scale
    # TODO(synk): running_mean/running_var state updates of nn.BatchNorm2d are
    # not modeled (forward activations only).

    # kernel 2: tiled, lane-dense normalize + PReLU (bf16 read, one f32 write).
    tm = _pick_row_tile(M, bn_row_tile)
    out2 = _bn_prelu(y.reshape(M, cout_p),
                     scale.reshape(1, cout_p), shift.reshape(1, cout_p),
                     alpha_p.reshape(1, cout_p), tm, linear)

    out = out2.reshape(N, OH, OW, cout_p)[:, :, :, :Cout]
    return jnp.transpose(out, (0, 3, 1, 2))


# ---------------- demo / check ----------------

if __name__ == "__main__":
    # ConvBlock(inp=4, oup=8, k=3, s=1, p=1, dw=False, linear=False)
    N, Cin, H, W = 2, 4, 16, 16
    Cout, K, S, P = 8, 3, 1, 1
    eps = 1e-5

    key = jax.random.PRNGKey(0)
    kx, kw, kg, kb = jax.random.split(key, 4)
    x = jax.random.normal(kx, (N, Cin, H, W), dtype=jnp.float32)
    fan_in = Cin * K * K
    weight = jax.random.normal(kw, (Cout, Cin, K, K), dtype=jnp.float32) * (2.0 / fan_in) ** 0.5
    gamma = 1.0 + 0.1 * jax.random.normal(kg, (Cout,), dtype=jnp.float32)
    beta = 0.1 * jax.random.normal(kb, (Cout,), dtype=jnp.float32)
    alpha = jnp.full((Cout,), 0.25, dtype=jnp.float32)          # PReLU default init

    out = conv_block(x, weight, gamma, beta, alpha, stride=S, padding=P,
                     eps=eps, linear=False)
    out = jax.block_until_ready(out)

    # pure-JAX f32 reference (same training-mode BN semantics)
    ref_c = jax.lax.conv_general_dilated(
        x, weight, (S, S), [(P, P), (P, P)],
        dimension_numbers=("NCHW", "OIHW", "NCHW"))
    mu = ref_c.mean(axis=(0, 2, 3), keepdims=True)
    var = ((ref_c - mu) ** 2).mean(axis=(0, 2, 3), keepdims=True)
    z = (ref_c - mu) / jnp.sqrt(var + eps) * gamma.reshape(1, -1, 1, 1) + beta.reshape(1, -1, 1, 1)
    ref = jnp.where(z >= 0, z, alpha.reshape(1, -1, 1, 1) * z)

    err = float(jnp.max(jnp.abs(out - ref)))
    assert out.shape == (N, Cout, H, W)
    # tolerance accounts for bf16 matmul operands + bf16 y intermediate
    # (f32 accumulation / f32 stats) vs the pure-f32 reference
    assert err < 1e-1, f"mismatch vs reference: {err}"
    print("KERNEL_OK")
</pallas_src>

<mosaic_0001>
module attributes {stable_mosaic.version = 11 : i64} {
  func.func @_conv_stats_kernel(%arg0: i32, %arg1: i32, %arg2: memref<1x18x18x4xbf16, #tpu.memory_space<vmem>>, %arg3: memref<36x128xbf16, #tpu.memory_space<vmem>>, %arg4: memref<1x128x128xbf16, #tpu.memory_space<vmem>>, %arg5: memref<1x1x8x128xf32, #tpu.memory_space<vmem>>, %arg6: memref<1x1x8x128xf32, #tpu.memory_space<vmem>>) attributes {dimension_semantics = [#tpu.dimension_semantics<parallel>, #tpu.dimension_semantics<parallel>], iteration_bounds = array<i64: 2, 2>, scalar_prefetch = 0 : i64, scratch_operands = 0 : i64, tpu.core_type = #tpu.core_type<tc>, window_params = [{transform_indices = @transform_0, window_bounds = array<i64: 1, 18, 18, 4>}, {pipeline_mode = #tpu.pipeline_mode<synchronous>, transform_indices = @transform_1, window_bounds = array<i64: 36, 128>}, {transform_indices = @transform_2, window_bounds = array<i64: 1, 128, 128>}, {transform_indices = @transform_3, window_bounds = array<i64: 1, 1, 8, 128>}, {transform_indices = @transform_4, window_bounds = array<i64: 1, 1, 8, 128>}]} {
    %c8_i32 = arith.constant 8 : i32
    %0 = arith.muli %arg1, %c8_i32 : i32
    %c0_i32 = arith.constant 0 : i32
    %1 = arith.addi %0, %c0_i32 : i32
    %c0 = arith.constant 0 : index
    %2 = arith.index_cast %1 : i32 to index
    %c0_0 = arith.constant 0 : index
    %c0_1 = arith.constant 0 : index
    %3 = vector.load %arg2[%c0, %2, %c0_0, %c0_1] : memref<1x18x18x4xbf16, #tpu.memory_space<vmem>>, vector<1x8x16x4xbf16>
    %4 = vector.shape_cast %3 : vector<1x8x16x4xbf16> to vector<8x16x4xbf16>
    %5 = vector.shape_cast %4 : vector<8x16x4xbf16> to vector<128x4xbf16>
    %c0_i32_2 = arith.constant 0 : i32
    %6 = arith.addi %0, %c0_i32_2 : i32
    %c0_3 = arith.constant 0 : index
    %7 = arith.index_cast %6 : i32 to index
    %c1 = arith.constant 1 : index
    %c0_4 = arith.constant 0 : index
    %8 = vector.load %arg2[%c0_3, %7, %c1, %c0_4] : memref<1x18x18x4xbf16, #tpu.memory_space<vmem>>, vector<1x8x16x4xbf16>
    %9 = vector.shape_cast %8 : vector<1x8x16x4xbf16> to vector<8x16x4xbf16>
    %10 = vector.shape_cast %9 : vector<8x16x4xbf16> to vector<128x4xbf16>
    %c0_i32_5 = arith.constant 0 : i32
    %11 = arith.addi %0, %c0_i32_5 : i32
    %c0_6 = arith.constant 0 : index
    %12 = arith.index_cast %11 : i32 to index
    %c2 = arith.constant 2 : index
    %c0_7 = arith.constant 0 : index
    %13 = vector.load %arg2[%c0_6, %12, %c2, %c0_7] : memref<1x18x18x4xbf16, #tpu.memory_space<vmem>>, vector<1x8x16x4xbf16>
    %14 = vector.shape_cast %13 : vector<1x8x16x4xbf16> to vector<8x16x4xbf16>
    %15 = vector.shape_cast %14 : vector<8x16x4xbf16> to vector<128x4xbf16>
    %c1_i32 = arith.constant 1 : i32
    %16 = arith.addi %0, %c1_i32 : i32
    %c0_8 = arith.constant 0 : index
    %17 = arith.index_cast %16 : i32 to index
    %c0_9 = arith.constant 0 : index
    %c0_10 = arith.constant 0 : index
    %18 = vector.load %arg2[%c0_8, %17, %c0_9, %c0_10] : memref<1x18x18x4xbf16, #tpu.memory_space<vmem>>, vector<1x8x16x4xbf16>
    %19 = vector.shape_cast %18 : vector<1x8x16x4xbf16> to vector<8x16x4xbf16>
    %20 = vector.shape_cast %19 : vector<8x16x4xbf16> to vector<128x4xbf16>
    %c1_i32_11 = arith.constant 1 : i32
    %21 = arith.addi %0, %c1_i32_11 : i32
    %c0_12 = arith.constant 0 : index
    %22 = arith.index_cast %21 : i32 to index
    %c1_13 = arith.constant 1 : index
    %c0_14 = arith.constant 0 : index
    %23 = vector.load %arg2[%c0_12, %22, %c1_13, %c0_14] : memref<1x18x18x4xbf16, #tpu.memory_space<vmem>>, vector<1x8x16x4xbf16>
    %24 = vector.shape_cast %23 : vector<1x8x16x4xbf16> to vector<8x16x4xbf16>
    %25 = vector.shape_cast %24 : vector<8x16x4xbf16> to vector<128x4xbf16>
    %c1_i32_15 = arith.constant 1 : i32
    %26 = arith.addi %0, %c1_i32_15 : i32
    %c0_16 = arith.constant 0 : index
    %27 = arith.index_cast %26 : i32 to index
    %c2_17 = arith.constant 2 : index
    %c0_18 = arith.constant 0 : index
    %28 = vector.load %arg2[%c0_16, %27, %c2_17, %c0_18] : memref<1x18x18x4xbf16, #tpu.memory_space<vmem>>, vector<1x8x16x4xbf16>
    %29 = vector.shape_cast %28 : vector<1x8x16x4xbf16> to vector<8x16x4xbf16>
    %30 = vector.shape_cast %29 : vector<8x16x4xbf16> to vector<128x4xbf16>
    %c2_i32 = arith.constant 2 : i32
    %31 = arith.addi %0, %c2_i32 : i32
    %c0_19 = arith.constant 0 : index
    %32 = arith.index_cast %31 : i32 to index
    %c0_20 = arith.constant 0 : index
    %c0_21 = arith.constant 0 : index
    %33 = vector.load %arg2[%c0_19, %32, %c0_20, %c0_21] : memref<1x18x18x4xbf16, #tpu.memory_space<vmem>>, vector<1x8x16x4xbf16>
    %34 = vector.shape_cast %33 : vector<1x8x16x4xbf16> to vector<8x16x4xbf16>
    %35 = vector.shape_cast %34 : vector<8x16x4xbf16> to vector<128x4xbf16>
    %c2_i32_22 = arith.constant 2 : i32
    %36 = arith.addi %0, %c2_i32_22 : i32
    %c0_23 = arith.constant 0 : index
    %37 = arith.index_cast %36 : i32 to index
    %c1_24 = arith.constant 1 : index
    %c0_25 = arith.constant 0 : index
    %38 = vector.load %arg2[%c0_23, %37, %c1_24, %c0_25] : memref<1x18x18x4xbf16, #tpu.memory_space<vmem>>, vector<1x8x16x4xbf16>
    %39 = vector.shape_cast %38 : vector<1x8x16x4xbf16> to vector<8x16x4xbf16>
    %40 = vector.shape_cast %39 : vector<8x16x4xbf16> to vector<128x4xbf16>
    %c2_i32_26 = arith.constant 2 : i32
    %41 = arith.addi %0, %c2_i32_26 : i32
    %c0_27 = arith.constant 0 : index
    %42 = arith.index_cast %41 : i32 to index
    %c2_28 = arith.constant 2 : index
    %c0_29 = arith.constant 0 : index
    %43 = vector.load %arg2[%c0_27, %42, %c2_28, %c0_29] : memref<1x18x18x4xbf16, #tpu.memory_space<vmem>>, vector<1x8x16x4xbf16>
    %44 = vector.shape_cast %43 : vector<1x8x16x4xbf16> to vector<8x16x4xbf16>
    %45 = vector.shape_cast %44 : vector<8x16x4xbf16> to vector<128x4xbf16>
    %46 = tpu.concatenate %5, %10, %15, %20, %25, %30, %35, %40, %45 in 1 : vector<128x4xbf16>, vector<128x4xbf16>, vector<128x4xbf16>, vector<128x4xbf16>, vector<128x4xbf16>, vector<128x4xbf16>, vector<128x4xbf16>, vector<128x4xbf16>, vector<128x4xbf16> -> vector<128x36xbf16>
    %c0_30 = arith.constant 0 : index
    %c0_31 = arith.constant 0 : index
    %47 = vector.load %arg3[%c0_30, %c0_31] : memref<36x128xbf16, #tpu.memory_space<vmem>>, vector<36x128xbf16>
    %cst = arith.constant dense<0.000000e+00> : vector<128x128xf32>
    %48 = tpu.matmul %46, %47, %cst {dimension_numbers = #tpu.dot_dimension_numbers<[1], [0], [0], [1], [0, 0, 1, 1], [], []>} : vector<128x36xbf16>, vector<36x128xbf16>, vector<128x128xf32> -> vector<128x128xf32>
    %49 = arith.truncf %48 : vector<128x128xf32> to vector<128x128xbf16>
    %c0_32 = arith.constant 0 : index
    %c0_33 = arith.constant 0 : index
    %c0_34 = arith.constant 0 : index
    %50 = vector.load %arg4[%c0_32, %c0_33, %c0_34] : memref<1x128x128xbf16, #tpu.memory_space<vmem>>, vector<1x128x128xbf16>
    %51 = vector.shape_cast %50 : vector<1x128x128xbf16> to vector<128x128xbf16>
    %52 = vector.shape_cast %49 : vector<128x128xbf16> to vector<1x128x128xbf16>
    tpu.vector_store %arg4[%c0_32, %c0_33, %c0_34], %52 {strides = array<i32>} : memref<1x128x128xbf16, #tpu.memory_space<vmem>>, vector<1x128x128xbf16>,
    %53 = vector.shape_cast %48 : vector<128x128xf32> to vector<16x8x128xf32>
    %cst_35 = arith.constant dense<0.000000e+00> : vector<8x128xf32>
    %54 = vector.multi_reduction <add>, %53, %cst_35 [0] : vector<16x8x128xf32> to vector<8x128xf32>
    %c0_36 = arith.constant 0 : index
    %c0_37 = arith.constant 0 : index
    %c0_38 = arith.constant 0 : index
    %c0_39 = arith.constant 0 : index
    %55 = vector.load %arg5[%c0_36, %c0_37, %c0_38, %c0_39] : memref<1x1x8x128xf32, #tpu.memory_space<vmem>>, vector<1x1x8x128xf32>
    %56 = vector.shape_cast %55 : vector<1x1x8x128xf32> to vector<8x128xf32>
    %57 = vector.shape_cast %54 : vector<8x128xf32> to vector<1x1x8x128xf32>
    tpu.vector_store %arg5[%c0_36, %c0_37, %c0_38, %c0_39], %57 {strides = array<i32>} : memref<1x1x8x128xf32, #tpu.memory_space<vmem>>, vector<1x1x8x128xf32>,
    %58 = arith.mulf %48, %48 : vector<128x128xf32>
    %59 = vector.shape_cast %58 : vector<128x128xf32> to vector<16x8x128xf32>
    %cst_40 = arith.constant dense<0.000000e+00> : vector<8x128xf32>
    %60 = vector.multi_reduction <add>, %59, %cst_40 [0] : vector<16x8x128xf32> to vector<8x128xf32>
    %c0_41 = arith.constant 0 : index
    %c0_42 = arith.constant 0 : index
    %c0_43 = arith.constant 0 : index
    %c0_44 = arith.constant 0 : index
    %61 = vector.load %arg6[%c0_41, %c0_42, %c0_43, %c0_44] : memref<1x1x8x128xf32, #tpu.memory_space<vmem>>, vector<1x1x8x128xf32>
    %62 = vector.shape_cast %61 : vector<1x1x8x128xf32> to vector<8x128xf32>
    %63 = vector.shape_cast %60 : vector<8x128xf32> to vector<1x1x8x128xf32>
    tpu.vector_store %arg6[%c0_41, %c0_42, %c0_43, %c0_44], %63 {strides = array<i32>} : memref<1x1x8x128xf32, #tpu.memory_space<vmem>>, vector<1x1x8x128xf32>,
    return
  }
  func.func @transform_0(%arg0: i32, %arg1: i32) -> (i32, i32, i32, i32) {
    %c0_i32 = arith.constant 0 : i32
    %c0_i32_0 = arith.constant 0 : i32
    %c0_i32_1 = arith.constant 0 : i32
    %c0_i32_2 = arith.constant 0 : i32
    return %arg0, %c0_i32, %c0_i32_0, %c0_i32_1 : i32, i32, i32, i32
  }
  func.func @transform_1(%arg0: i32, %arg1: i32) -> (i32, i32) {
    %c0_i32 = arith.constant 0 : i32
    %c0_i32_0 = arith.constant 0 : i32
    %c0_i32_1 = arith.constant 0 : i32
    return %c0_i32, %c0_i32_0 : i32, i32
  }
  func.func @transform_2(%arg0: i32, %arg1: i32) -> (i32, i32, i32) {
    %c0_i32 = arith.constant 0 : i32
    %c0_i32_0 = arith.constant 0 : i32
    return %arg0, %arg1, %c0_i32 : i32, i32, i32
  }
  func.func @transform_3(%arg0: i32, %arg1: i32) -> (i32, i32, i32, i32) {
    %c0_i32 = arith.constant 0 : i32
    %c0_i32_0 = arith.constant 0 : i32
    %c0_i32_1 = arith.constant 0 : i32
    return %arg0, %arg1, %c0_i32, %c0_i32_0 : i32, i32, i32, i32
  }
  func.func @transform_4(%arg0: i32, %arg1: i32) -> (i32, i32, i32, i32) {
    %c0_i32 = arith.constant 0 : i32
    %c0_i32_0 = arith.constant 0 : i32
    %c0_i32_1 = arith.constant 0 : i32
    return %arg0, %arg1, %c0_i32, %c0_i32_0 : i32, i32, i32, i32
  }
}

</mosaic_0001>

<bundles_post_ra>
// kernel: tpu_custom_call.1
= control target key start
LH: loop header
LB: loop body
LE: loop exit
PB: predicated region body
PF: predicated region fallthrough
CT: control target
= control target key end

     0   :  { %s3759_s0 = inlined_call_operand.vmem [shape: bf16[2,18,18,4], index: 0, kind: input, shape index: {}]   ;;  %s3760_s1 = inlined_call_operand.vmem [shape: bf16[36,128], index: 1, kind: input, shape index: {}]   ;;  %s3761_s2 = inlined_call_operand.hbm [shape: bf16[2,256,128], index: 2, kind: output, shape index: {0}]   ;;  %s3762_s3 = inlined_call_operand.hbm [shape: f32[2,2,8,128], index: 3, kind: output, shape index: {1}]   ;;  %s3763_s4 = inlined_call_operand.hbm [shape: f32[2,2,8,128], index: 4, kind: output, shape index: {2}]  }
   0x1   :  { %3766 = sst [smem:[#allocation9_spill]] %s3759_s0 }
   0x2   :  { %3767 = sst [smem:[#allocation10_spill]] %s3760_s1 }
   0x3   :  { %10 = vsyncpa [#allocation3], 0 }
   0x4   :  { %12 = vsyncpa [#allocation3 + $0x1], 0 }
   0x5   :  { %13 = vsyncpa [#allocation5], 0 }
   0x6   :  { %15 = vsyncpa [#allocation5 + $0x1], 0  ;;  %s2790_s15 = smov 0   ;;  %s2792_s16 = smov 0  }
   0x7   :  { %s2794_s17 = smov 0   ;;  %s2796_s18 = smov 0  }
   0x8   :  { %s2798_s19 = smov 0   ;;  %s2800_s20 = smov 0  }
   0x9   :  { %s2802_s21 = smov 0   ;;  %s2804_s22 = smov 0  }
   0xa LB: > { %s2149_s23 = sadd.s32 4294967295, %s2751_s22   ;;  %s3764_s24 = sadd.s32 4294967294, %s2751_s22   ;;  %s2751_s22 = sphi %s2804_s22, %s21_s22   ;;  %s2747_s21 = sphi %s2802_s21, %s3786_s21   ;;  %s2743_s20 = sphi %s2800_s20, %s3785_s20   ;;  %s2739_s19 = sphi %s2798_s19, %s3784_s19   ;;  %s2735_s18 = sphi %s2796_s18, %s3783_s18   ;;  %s2731_s17 = sphi %s2794_s17, %s3782_s17   ;;  %s2727_s16 = sphi %s2792_s16, %s3781_s16   ;;  %s2723_s15 = sphi %s2790_s15, %s3780_s15  }
   0xb   : > { %s30_s25 = sadd.s32 1, %s2743_s20  ;;  %s33_s26 = sadd.s32 1, %s2747_s21 }
   0xc   : > { %p31_p0 = scmp.ge.s32.totalorder %s30_s25, 2  ;;  %p99_p1 = scmp.ne.s32.totalorder %s2731_s17, %s2727_s16 }
   0xd   : > { %p100_p2 = scmp.eq.s32.totalorder %s2149_s23, 3  ;;  %p105_p5 = scmp.ne.s32.totalorder %s2727_s16, %s2723_s15 }
   0xe   : > { %s3788_s25 = smov (%p31_p0, %s30_s25), 0  ;;  %s3790_s26 = smov (!%p31_p0, %s33_s26), %s2747_s21 }
   0xf   : > { %s85_s27 = ssub.s32 %s2743_s20, %s3788_s25  ;;  %p2843_p3 = por %p100_p2, %p99_p1 }
  0x10   : > { %p35_p4 = scmp.ge.s32.totalorder %s3790_s26, 2  ;;  %p106_p6 = scmp.eq.s32.totalorder %s3764_s24, 3 }
  0x11   : > { %p2153_p7 = scmp.ge.s32.totalorder %s2751_s22, 1  ;;  %p191_p9 = scmp.lt.s32.totalorder %s2751_s22, 5 }
  0x12   : > { %s3792_s26 = smov (%p35_p4, %s3790_s26), 0  ;;  %p2854_p8 = por %p106_p6, %p105_p5 }
  0x13   : > { %s84_s30 = ssub.s32 %s2747_s21, %s3792_s26  ;;  %s89_s5 = sadd.s32 1, %s2731_s17 }
  0x14   : > { %s86_s6 = sor.u32 %s85_s27, %s84_s30  ;;  %p192_p10 = pnand %p2153_p7, %p191_p9 }
  0x15   : > { %p87_p11 = scmp.eq.s32.totalorder %s86_s6, 0  ;;  %p227_p12 = scmp.lt.s32.totalorder (!%p192_p10), %s2739_s19, 1  ;;  %vm489_vm0 = vcmask (!%p192_p10), 1042432   ;;  %vm490_vm1 = vcmask (!%p192_p10), 1046532   ;;  %vm262_vm3 = vsmask.f32 (!%p192_p10), 3328 }
  0x16   : > { %195 = sbr.rel (%p192_p10) target bundleno = 586 (0x24a), region = 28  ;;  %s3770_s0 = sld [smem:[#allocation9_spill]] (!%p192_p10)  ;;  %vm2915_vm2 = vmor (!%p192_p10), %vm489_vm0, %vm490_vm1  ;;  %vm263_vm4 = vsmask.f32 (!%p192_p10), 7440  ;;  %vm1532_vm6 = vcmask (!%p192_p10), 31744   ;;  %vm1557_vm7 = vcmask (!%p192_p10), 64512  }
  0x17   : > { %s2863_s7 = scalar_select %p87_p11, %s2731_s17, %s89_s5  }
  0x18   : > { %s2364_s9 = smul.u32 (!%p192_p10), 96, %s2735_s18  ;;  %s2753_s27 = smov (!%p192_p10), 12   ;;  %vm2962_vm5 = vmor (!%p192_p10), %vm262_vm3, %vm263_vm4  ;;  %vm1574_vm8 = vcmask (!%p192_p10), 97280   ;;  %vm1591_vm9 = vcmask (!%p192_p10), 130048   ;;  %vm1608_vm10 = vcmask (!%p192_p10), 162816   ;;  %vm1625_vm11 = vcmask (!%p192_p10), 195584  }
  0x19   : > { %s2754_s30 = smov (!%p192_p10), 24   ;;  %s2755_s5 = smov (!%p192_p10), 20   ;;  %vm1713_vm12 = vcmask (!%p192_p10), 1041408   ;;  %vm1642_vm13 = vcmask (!%p192_p10), 228352   ;;  %vm1659_vm14 = vcmask (!%p192_p10), 261120   ;;  %vm1696_vm15 = vcmask (!%p192_p10), 293888  }
  0x1a   : > { %s2756_s6 = smov (!%p192_p10), 8   ;;  %s3775_s1 = sld [smem:[#allocation10_spill]] (!%p192_p10) }
  0x1b   : > { %s2355_s11 = sshll.u32 (!%p192_p10), %s2735_s18, 4  ;;  %s2356_s12 = sshll.u32 (!%p192_p10), %s2739_s19, 5 }
  0x1c   : > { %s3615_s24 = sand.u32 (!%p192_p10), 1, %s2149_s23  }
  0x1d   : > { %s228_s8 = scalar_select %p227_p12, %s2739_s19, 1 }
  0x1f   : > { %s2469_s10 = smul.u32 216, %s228_s8  ;;  %s3765_s8 = smov 4  }
  0x21   : > { %s231_s13 = scalar_lea.vmem %s3770_s0, %s2469_s10  ;;  %s2760_s10 = smov 32  }
  0x22   : > { %s2871_s14 = scalar_lea.vmem %s231_s13, %s2364_s9  ;;  %s2758_s13 = smov 16  }
  0x23   : > { %v2173_v0 = vld [vmem:[%s2871_s14 + $0x18] sm:$0xf]  ;;  %v2875_v1 = vld [vmem:[%s2871_s14 + $0x1c] sm:$0xf]  ;;  %v2171_v2 = vld [vmem:[%s2871_s14 + $0xc] sm:$0xf] }
  0x24   : > { %v610_v3 = vshll.u32 %v2875_v1, 16  ;;  %v614_v4 = vshrl.u32 %v2875_v1, 16  ;;  %v2278_v5 = vcombine.low %v2173_v0, %v2875_v1  ;;  %v601_v6 = vshrl.u32 %v2173_v0, 16  ;;  %v2882_v7 = vld [vmem:[%s2871_s14 + $0x10] sm:$0xf]  ;;  %s2759_s9 = smov 28  }
  0x25   : > { %v604_v8 = vshll.u32 %v2173_v0, 16  ;;  %v586_v9 = vshll.u32 %v2882_v7, 16  ;;  %v590_v10 = vshrl.u32 %v2882_v7, 16  ;;  %v2277_v11 = vcombine.low %v2171_v2, %v2882_v7  ;;  %v2215_v12 = vld [vmem:[%s2871_s14 + $0x24] sm:$0xf] }
  0x26   : > { %v2888_v13 = vrot.slane %v614_v4, 4  ;;  %1310 = vrot.lane.b32.xlu1 %v2278_v5, %s2753_s27  ;;  %v603_v14 = vrot.slane %v601_v6, 4  ;;  %v577_v15 = vshrl.u32 %v2171_v2, 16  ;;  %v580_v16 = vshll.u32 %v2171_v2, 16  ;;  %v2892_v17 = vld [vmem:[%s2871_s14 + $0x28] sm:$0xf] }
  0x27   : > { %v606_v18 = vrot.slane %v604_v8, 5  ;;  %v2894_v19 = vrot.slane %v590_v10, 4  ;;  %1308 = vrot.lane.b32.xlu0 %v2277_v11, %s2753_s27  ;;  %v909_v20 = vshrl.u32 %v2215_v12, 16  ;;  %v912_v21 = vshll.u32 %v2215_v12, 16  ;;  %v2213_v22 = vld [vmem:[%s2871_s14 + $0x18] sm:$0xf] }
  0x28   : > { %v579_v23 = vrot.slane %v577_v15, 4  ;;  %v582_v24 = vrot.slane %v580_v16, 5  ;;  %v922_v25 = vshrl.u32 %v2892_v17, 16  ;;  %v2302_v26 = vcombine.low %v2215_v12, %v2892_v17  ;;  %v2901_v27 = vld [vmem:[%s2871_s14 + $0x1c] sm:$0xf] }
  0x29   : > { %v607_v28 = vor.u32 %v606_v18, %v603_v14  ;;  %v2903_v29 = vrot.slane %v909_v20, 4  ;;  %v2905_v30 = vrot.slane %v912_v21, 5  ;;  %v885_v31 = vshrl.u32 %v2213_v22, 16  ;;  %v2908_v32 = vld [vmem:[%s2871_s14 + $0x14] sm:$0x1] }
  0x2a   : > { %v583_v33 = vor.u32 %v582_v24, %v579_v23  ;;  %1438 = vrot.lane.b32.xlu1 %v2302_v26, %s2754_s30  ;;  %v888_v34 = vshll.u32 %v2213_v22, 16  ;;  %v898_v35 = vshrl.u32 %v2901_v27, 16  ;;  %v2301_v36 = vcombine.low %v2213_v22, %v2901_v27  ;;  %v2195_v38 = vld [vmem:[%s2871_s14 + $0xc] sm:$0xe]  ;;  %v239_v39 = vld [vmem:[%s2871_s14 + $0x4] sm:$0xf] }
  0x2b   : > { %v2921_v40 = vrot.slane %v607_v28, 4  ;;  %v2923_v41 = vrot.slane %v885_v31, 4  ;;  %v2203_v42 = vrot.slane %v2195_v38, 9  ;;  %v802_v43 = vrot.slane %v2882_v7, 5  ;;  %v254_v44 = vld [vmem:[%s2871_s14 + $0x8] sm:$0x1] }
  0x2c   : > { %v2927_v45 = vrot.slane %v583_v33, 4  ;;  %v2929_v46 = vrot.slane %v888_v34, 5  ;;  %1436 = vrot.lane.b32.xlu0 %v2301_v36, %s2754_s30  ;;  %v805_v47 = vrot.slane %v2908_v32, 5  ;;  %v457_v48 = vld [vmem:[%s2871_s14] sm:$0xe]  ;;  %v494_v49 = vrot.slane %v239_v39, 5 }
  0x2d   : > { %v803_v50 = vsel %vm2915_vm2, %v2203_v42, %v802_v43  ;;  %v804_v51 = vrot.slane %v802_v43, 4  ;;  %v2161_v52 = vrot.slane %v457_v48, 9  ;;  %v497_v53 = vrot.slane %v254_v44, 5  ;;  %v241_v54 = vld [vmem:[%s2871_s14 + $0x10] sm:$0xf] }
  0x2e   : > { %v496_v55 = vrot.slane %v494_v49, 4  ;;  %v255_v56 = vld [vmem:[%s2871_s14 + $0x14] sm:$0x1]  ;;  %v458_v57 = vld [vmem:[%s2871_s14 + $0xc] sm:$0xe]  ;;  %v501_v58 = vrot.slane %v241_v54, 5  ;;  %v915_v59 = vor.u32 %v2905_v30, %v2903_v29  ;;  %v891_v60 = vor.u32 %v2929_v46, %v2923_v41 }
  0x2f   : > { %v806_v61 = vsel %vm2915_vm2, %v804_v51, %v805_v47  ;;  %v495_v62 = vsel %vm2915_vm2, %v2161_v52, %v494_v49  ;;  %v2162_v63 = vrot.slane %v458_v57, 9  ;;  %v504_v0 = vrot.slane %v255_v56, 5  ;;  %v238_v2 = vld [vmem:[%s2871_s14] sm:$0xf]  ;;  %v2196_v10 = vld [vmem:[%s2871_s14 + $0x18] sm:$0xe] }
  0x30   : > { %v2293_v4 = vcombine.low %v803_v50, %v806_v61  ;;  %v498_v5 = vsel %vm2915_vm2, %v496_v55, %v497_v53  ;;  %v503_v6 = vrot.slane %v501_v58, 4  ;;  %v266_v8 = vshrl.u32 %v238_v2, 16  ;;  %v2188_v16 = vld [vmem:[%s2871_s14 + $0x20] sm:$0x1]  ;;  %v240_v23 = vld [vmem:[%s2871_s14 + $0xc] sm:$0xf] }
  0x31   : > { %v2269_v11 = vcombine.low %v495_v62, %v498_v5  ;;  %v502_v12 = vsel %vm2915_vm2, %v2162_v63, %v501_v58  ;;  %v269_v14 = vshll.u32 %v238_v2, 16  ;;  %v275_v15 = vshll.u32 %v239_v39, 16  ;;  %v3026_v41 = vld [vmem:[%s2871_s14 + $0x1c] sm:$0xf] }
  0x32   : > { %1388 = vrot.lane.b32.xlu0 %v2293_v4, %s2755_s5  ;;  %v505_v18 = vsel %vm2915_vm2, %v503_v6, %v504_v0  ;;  %v268_v20 = vrot.slane %v266_v8, 4  ;;  %v279_v21 = vshrl.u32 %v239_v39, 16  ;;  %v285_v22 = vshll.u32 %v254_v44, 16  ;;  %v2581_v39 = vld [vmem:[%s3775_s1 + $0x10] ss:$0 sps:$4 sm:$0x33]  }
  0x33   : > { %1260 = vrot.lane.b32.xlu1 %v2269_v11, %s2756_s6  ;;  %v2270_v24 = vcombine.low %v502_v12, %v505_v18  ;;  %v271_v26 = vrot.slane %v269_v14, 5  ;;  %v277_v28 = vrot.slane %v275_v15, 5  ;;  %v2204_v31 = vrot.slane %v2196_v10, 9 }
  0x34   : > { %v281_v33 = vrot.slane %v279_v21, 4  ;;  %v287_v34 = vrot.slane %v285_v22, 5  ;;  %v809_v36 = vrot.slane %v2875_v1, 5  ;;  %v812_v38 = vrot.slane %v2188_v16, 5  ;;  %v2989_v21 = vld [vmem:[%s2871_s14 + $0x2c] sm:$0x1] }
  0x35   : > { %v272_v42 = vor.u32 %v271_v26, %v268_v20  ;;  %v290_v43 = vshrl.u32 %v240_v23, 16  ;;  %v293_v47 = vshll.u32 %v240_v23, 16  ;;  %v299_v48 = vshll.u32 %v241_v54, 16  ;;  %v2578_v23 = vld [vmem:[%s3775_s1] sm:$0xff]  }
  0x36   : > { %v282_v44 = vor.u32 %v281_v33, %v277_v28  ;;  %v810_v49 = vsel %vm2915_vm2, %v2204_v31, %v809_v36  ;;  %v811_v50 = vrot.slane %v809_v36, 4  ;;  %v303_v51 = vshrl.u32 %v241_v54, 16  ;;  %v3009_v26 = vld [vmem:[%s2871_s14 + $0x20] sm:$0x1]  ;;  %2439 = vmatprep.subr.bf16.mxu0 %v2578_v23  ;;  %2461 = vmatprep.subr.bf16.mxu1 %v2578_v23 }
  0x37   : > { %1262 = vrot.lane.b32.xlu1 %v2270_v24, %s2756_s6  ;;  %v273_v52 = vrot.slane %v272_v42, 4  ;;  %v292_v53 = vrot.slane %v290_v43, 4  ;;  %v295_v55 = vrot.slane %v293_v47, 5  ;;  %v301_v57 = vrot.slane %v299_v48, 5  ;;  %2440 = vmatpush3.bf16.msra.mxu0 %v2578_v23 }
  0x38   : > { %v283_v58 = vrot.slane %v282_v44, 4  ;;  %v813_v61 = vsel %vm2915_vm2, %v811_v50, %v812_v38  ;;  %v305_v62 = vrot.slane %v303_v51, 4  ;;  %v309_v63 = vshll.u32 %v255_v56, 16  ;;  %2464 = vmatpush3.bf16.msra.mxu1 %v2578_v23 }
  0x39   : > { %v278_v0 = vsel %vm2962_vm5, %v273_v52, %v277_v28  ;;  %v2294_v2 = vcombine.low %v810_v49, %v813_v61  ;;  %v296_v4 = vor.u32 %v295_v55, %v292_v53  ;;  %v612_v54 = vrot.slane %v610_v3, 5  ;;  %v242_v28 = vld [vmem:[%s2871_s14 + $0x18] sm:$0xf] }
  0x3a   : > { %v288_v5 = vsel %vm2962_vm5, %v283_v58, %v287_v34  ;;  %v306_v6 = vor.u32 %v305_v62, %v301_v57  ;;  %v311_v8 = vrot.slane %v309_v63, 5  ;;  %v620_v10 = vshll.u32 %v2188_v16, 16  ;;  %v2579_v34 = vld [vmem:[%s3775_s1 + $0x8] sm:$0xff]  }
  0x3b   : > { %v2261_v11 = vcombine.low %v278_v0, %v288_v5  ;;  %1390 = vrot.lane.b32.xlu1 %v2294_v2, %s2755_s5  ;;  %v297_v12 = vrot.slane %v296_v4, 4  ;;  %v613_v56 = vsel %vm2962_vm5, %v2921_v40, %v612_v54  ;;  %v617_v14 = vor.u32 %v2888_v13, %v612_v54  ;;  %2441 = vmatprep.subr.bf16.mxu0 %v2579_v34  ;;  %v244_v0 = vld [vmem:[%s2871_s14 + $0x24] sm:$0xf] }
  0x3c   : > { %v307_v15 = vrot.slane %v306_v6, 4  ;;  %v622_v1 = vrot.slane %v620_v10, 5  ;;  %v588_v3 = vrot.slane %v586_v9, 5  ;;  %v596_v18 = vshll.u32 %v2908_v32, 16  ;;  %2462 = vmatprep.subr.bf16.mxu1 %v2579_v34  ;;  %2442 = vmatpush3.bf16.msra.mxu0 %v2579_v34 }
  0x3d   : > { %1220 = vrot.lane.b32.xlu0 %v2261_v11, %s3765_s8  ;;  %v302_v16 = vsel %vm2962_vm5, %v297_v12, %v301_v57  ;;  %v618_v20 = vrot.slane %v617_v14, 4  ;;  %v916_v13 = vrot.slane %v915_v59, 4  ;;  %v918_v7 = vshll.u32 %v2892_v17, 16  ;;  %v2237_v57 = vld [vmem:[%s2871_s14 + $0x18] sm:$0xe]  ;;  %2465 = vmatpush3.bf16.msra.mxu1 %v2579_v34 }
  0x3e   : > { %v312_v9 = vsel %vm2962_vm5, %v307_v15, %v311_v8  ;;  %v589_v32 = vsel %vm2962_vm5, %v2927_v45, %v588_v3  ;;  %v593_v40 = vor.u32 %v2894_v19, %v588_v3  ;;  %v598_v22 = vrot.slane %v596_v18, 5  ;;  %v245_v15 = vld [vmem:[%s2871_s14 + $0x28] sm:$0xf]  ;;  %2467 = vmatprep.subr.msk.bf16.mxu0 %vm1713_vm12, %v2581_v39  ;;  %2468 = vmatprep.subr.msk.bf16.mxu1 %vm1713_vm12, %v2581_v39 }
  0x3f   : > { %v2262_v24 = vcombine.low %v302_v16, %v312_v9  ;;  %v623_v29 = vsel %vm2962_vm5, %v618_v20, %v622_v1  ;;  %v920_v30 = vrot.slane %v918_v7, 5  ;;  %v924_v59 = vrot.slane %v922_v25, 4 }
  0x40   : > { %v2286_v45 = vcombine.low %v613_v56, %v623_v29  ;;  %v594_v31 = vrot.slane %v593_v40, 4  ;;  %v928_v19 = vshll.u32 %v2989_v21, 16  ;;  %v892_v33 = vrot.slane %v891_v60, 4  ;;  %v2238_v40 = vld [vmem:[%s2871_s14 + $0x24] sm:$0xe] }
  0x41   : > { %1222 = vrot.lane.b32.xlu0 %v2262_v24, %s3765_s8  ;;  %v921_v25 = vsel %vm2962_vm5, %v916_v13, %v920_v30  ;;  %v925_v36 = vor.u32 %v924_v59, %v920_v30  ;;  %v894_v38 = vshll.u32 %v2901_v27, 16  ;;  %v900_v42 = vrot.slane %v898_v35, 4  ;;  %v3033_v35 = vld [vmem:[%s2871_s14 + $0x20] sm:$0x1] }
  0x42   : > { %1350 = vrot.lane.b32.xlu1 %v2286_v45, %s2758_s13  ;;  %v599_v46 = vsel %vm2962_vm5, %v594_v31, %v598_v22  ;;  %v930_v60 = vrot.slane %v928_v19, 5  ;;  %v904_v43 = vshll.u32 %v3009_v26, 16  ;;  %v314_v47 = vshrl.u32 %v242_v28, 16  ;;  %v460_v45 = vld [vmem:[%s2871_s14 + $0x24] sm:$0xe] }
  0x43   : > { %v2285_v48 = vcombine.low %v589_v32, %v599_v46  ;;  %v926_v44 = vrot.slane %v925_v36, 4  ;;  %v896_v49 = vrot.slane %v894_v38, 5  ;;  %v317_v50 = vshll.u32 %v242_v28, 16 }
  0x44   : > { %v906_v51 = vrot.slane %v904_v43, 5  ;;  %v316_v52 = vrot.slane %v314_v47, 4  ;;  %v323_v53 = vshll.u32 %v3026_v41, 16  ;;  %v327_v55 = vshrl.u32 %v3026_v41, 16 }
  0x45   : > { %1348 = vrot.lane.b32.xlu0 %v2285_v48, %s2758_s13  ;;  %v931_v58 = vsel %vm2962_vm5, %v926_v44, %v930_v60  ;;  %v897_v61 = vsel %vm2962_vm5, %v892_v33, %v896_v49  ;;  %v901_v62 = vor.u32 %v900_v42, %v896_v49  ;;  %v319_v63 = vrot.slane %v317_v50, 5  ;;  %v3068_v44 = vld [vmem:[%s2871_s14 + $0x30] sm:$0xf] }
  0x46   : > { %v2310_v2 = vcombine.low %v921_v25, %v931_v58  ;;  %v325_v4 = vrot.slane %v323_v53, 5  ;;  %v329_v54 = vrot.slane %v327_v55, 4  ;;  %v333_v5 = vshll.u32 %v3033_v35, 16  ;;  %v459_v25 = vld [vmem:[%s2871_s14 + $0x18] sm:$0xe] }
  0x47   : > { %v902_v6 = vrot.slane %v901_v62, 4  ;;  %v320_v8 = vor.u32 %v319_v63, %v316_v52  ;;  %v2245_v10 = vrot.slane %v2237_v57, 9  ;;  %v1110_v11 = vrot.slane %v2901_v27, 5  ;;  %v257_v27 = vld [vmem:[%s2871_s14 + $0x2c] sm:$0x1] }
  0x48   : > { %1478 = vrot.lane.b32.xlu1 %v2310_v2, %s2759_s9  ;;  %v330_v12 = vor.u32 %v329_v54, %v325_v4  ;;  %v335_v56 = vrot.slane %v333_v5, 5  ;;  %v1113_v14 = vrot.slane %v3009_v26, 5  ;;  %v338_v1 = vshrl.u32 %v244_v0, 16  ;;  %v2178_v62 = vld [vmem:[%s2871_s14 + $0x34] sm:$0xf] }
  0x49   : > { %v907_v3 = vsel %vm2962_vm5, %v902_v6, %v906_v51  ;;  %v321_v18 = vrot.slane %v320_v8, 4  ;;  %v1111_v16 = vsel %vm2915_vm2, %v2245_v10, %v1110_v11  ;;  %v1112_v20 = vrot.slane %v1110_v11, 4  ;;  %v3091_v5 = vld [vmem:[%s2871_s14 + $0x28] sm:$0xf] }
  0x4a   : > { %v2309_v13 = vcombine.low %v897_v61, %v907_v3  ;;  %v331_v7 = vrot.slane %v330_v12, 4  ;;  %v340_v9 = vrot.slane %v338_v1, 4  ;;  %v341_v32 = vshll.u32 %v244_v0, 16  ;;  %v2175_v0 = vld [vmem:[%s2871_s14 + $0x24] sm:$0xf] }
  0x4b   : > { %v326_v22 = vsel %vm2962_vm5, %v321_v18, %v325_v4  ;;  %v1114_v23 = vsel %vm2915_vm2, %v1112_v20, %v1113_v14  ;;  %v347_v24 = vshll.u32 %v245_v15, 16  ;;  %v351_v29 = vshrl.u32 %v245_v15, 16  ;;  %v3103_v20 = vld [vmem:[%s2871_s14 + $0x2c] sm:$0x1] }
  0x4c   : > { %1476 = vrot.lane.b32.xlu0 %v2309_v13, %s2759_s9  ;;  %v336_v30 = vsel %vm2962_vm5, %v331_v7, %v335_v56  ;;  %v2317_v59 = vcombine.low %v1111_v16, %v1114_v23  ;;  %v343_v26 = vrot.slane %v341_v32, 5  ;;  %v357_v28 = vshll.u32 %v257_v27, 16  ;;  %v2198_v32 = vld [vmem:[%s2871_s14 + $0x30] sm:$0xe] }
  0x4d   : > { %v2263_v31 = vcombine.low %v326_v22, %v336_v30  ;;  %v349_v19 = vrot.slane %v347_v24, 5  ;;  %v353_v33 = vrot.slane %v351_v29, 4  ;;  %v2246_v34 = vrot.slane %v2238_v40, 9 }
  0x4e   : > { %v344_v36 = vor.u32 %v343_v26, %v340_v9  ;;  %v359_v38 = vrot.slane %v357_v28, 5  ;;  %v1117_v42 = vrot.slane %v2892_v17, 5  ;;  %v1120_v46 = vrot.slane %v2989_v21, 5  ;;  %v2197_v28 = vld [vmem:[%s2871_s14 + $0x24] sm:$0xe] }
  0x4f   : > { %1224 = vrot.lane.b32.xlu1 %v2263_v31, %s3765_s8  ;;  %v354_v60 = vor.u32 %v353_v33, %v349_v19  ;;  %v2164_v43 = vrot.slane %v460_v45, 9  ;;  %v515_v47 = vrot.slane %v245_v15, 5  ;;  %v518_v48 = vrot.slane %v257_v27, 5  ;;  %v2190_v15 = vld [vmem:[%s2871_s14 + $0x38] sm:$0x1] }
  0x50   : > { %1516 = vrot.lane.b32.xlu0 %v2317_v59, %s2760_s10  ;;  %v345_v49 = vrot.slane %v344_v36, 4  ;;  %v1118_v50 = vsel %vm2915_vm2, %v2246_v34, %v1117_v42  ;;  %v1119_v17 = vrot.slane %v1117_v42, 4  ;;  %v2163_v21 = vrot.slane %v459_v25, 9 }
  0x51   : > { %v355_v51 = vrot.slane %v354_v60, 4  ;;  %v516_v52 = vsel %vm2915_vm2, %v2164_v43, %v515_v47  ;;  %v517_v53 = vrot.slane %v515_v47, 4  ;;  %v508_v55 = vrot.slane %v3026_v41, 5  ;;  %v3112_v47 = vld [vmem:[%s2871_s14 + $0x3c] sm:$0xf] }
  0x52   : > { %v350_v57 = vsel %vm2962_vm5, %v345_v49, %v349_v19  ;;  %v1121_v58 = vsel %vm2915_vm2, %v1119_v17, %v1120_v46  ;;  %v511_v61 = vrot.slane %v3033_v35, 5  ;;  %v649_v63 = vshrl.u32 %v3068_v44, 16 }
  0x53   : > { %v360_v2 = vsel %vm2962_vm5, %v355_v51, %v359_v38  ;;  %v2318_v4 = vcombine.low %v1118_v50, %v1121_v58  ;;  %v519_v41 = vsel %vm2915_vm2, %v517_v53, %v518_v48  ;;  %v509_v54 = vsel %vm2915_vm2, %v2163_v21, %v508_v55 }
  0x54   : > { %v2264_v6 = vcombine.low %v350_v57, %v360_v2  ;;  %v2272_v35 = vcombine.low %v516_v52, %v519_v41  ;;  %v510_v8 = vrot.slane %v508_v55, 4  ;;  %v651_v10 = vrot.slane %v649_v63, 4  ;;  %v3129_v57 = vld [vmem:[%s2871_s14 + $0x40] sm:$0xf]  ;;  %v3139_v41 = vld [vmem:[%s2871_s14 + $0x34] sm:$0xf] }
  0x55   : > { %1518 = vrot.lane.b32.xlu0 %v2318_v4, %s2760_s10  ;;  %v652_v11 = vshll.u32 %v3068_v44, 16  ;;  %v662_v12 = vshrl.u32 %v2178_v62, 16  ;;  %v2280_v56 = vcombine.low %v3068_v44, %v2178_v62  ;;  %v625_v14 = vshrl.u32 %v2175_v0, 16 }
  0x56   : > { %1226 = vrot.lane.b32.xlu1 %v2264_v6, %s3765_s8  ;;  %v512_v1 = vsel %vm2915_vm2, %v510_v8, %v511_v61  ;;  %v628_v3 = vshll.u32 %v2175_v0, 16  ;;  %v638_v18 = vshrl.u32 %v3091_v5, 16  ;;  %v2279_v16 = vcombine.low %v2175_v0, %v3091_v5 }
  0x57   : > { %v2271_v27 = vcombine.low %v509_v54, %v512_v1  ;;  %v654_v13 = vrot.slane %v652_v11, 5  ;;  %v627_v7 = vrot.slane %v625_v14, 4  ;;  %v658_v9 = vshll.u32 %v2178_v62, 16 }
  0x58   : > { %v630_v40 = vrot.slane %v628_v3, 5  ;;  %v664_v22 = vrot.slane %v662_v12, 4  ;;  %v668_v23 = vshll.u32 %v2190_v15, 16  ;;  %v634_v24 = vshll.u32 %v3091_v5, 16 }
  0x59   : > { %1264 = vrot.lane.b32.xlu0 %v2271_v27, %s2756_s6  ;;  %v655_v29 = vor.u32 %v654_v13, %v651_v10  ;;  %v660_v30 = vrot.slane %v658_v9, 5  ;;  %v640_v59 = vrot.slane %v638_v18, 4  ;;  %v644_v26 = vshll.u32 %v3103_v20, 16  ;;  %v3154_v18 = vld [vmem:[%s2871_s14 + $0x38] sm:$0x1] }
  0x5a   : > { %1266 = vrot.lane.b32.xlu1 %v2272_v35, %s2756_s6  ;;  %v670_v45 = vrot.slane %v668_v23, 5  ;;  %v631_v31 = vor.u32 %v630_v40, %v627_v7  ;;  %v636_v19 = vrot.slane %v634_v24, 5  ;;  %v2206_v33 = vrot.slane %v2198_v32, 9  ;;  %v246_v7 = vld [vmem:[%s2871_s14 + $0x30] sm:$0xf] }
  0x5b   : > { %v656_v34 = vrot.slane %v655_v29, 4  ;;  %v665_v25 = vor.u32 %v664_v22, %v660_v30  ;;  %v646_v36 = vrot.slane %v644_v26, 5  ;;  %v823_v38 = vrot.slane %v2178_v62, 5  ;;  %v2217_v62 = vld [vmem:[%s2871_s14 + $0x30] sm:$0xf] }
  0x5c   : > { %v632_v42 = vrot.slane %v631_v31, 4  ;;  %v641_v46 = vor.u32 %v640_v59, %v636_v19  ;;  %v826_v60 = vrot.slane %v2190_v15, 5  ;;  %v2205_v43 = vrot.slane %v2197_v28, 9  ;;  %v3163_v59 = vld [vmem:[%s2871_s14 + $0x34] sm:$0xf] }
  0x5d   : > { %1312 = vrot.lane.b32.xlu0 %v2279_v16, %s2753_s27  ;;  %v661_v48 = vsel %vm2962_vm5, %v656_v34, %v660_v30  ;;  %v666_v44 = vrot.slane %v665_v25, 4  ;;  %v824_v49 = vsel %vm2915_vm2, %v2206_v33, %v823_v38  ;;  %v825_v50 = vrot.slane %v823_v38, 4  ;;  %v2239_v38 = vld [vmem:[%s2871_s14 + $0x30] sm:$0xe] }
  0x5e   : > { %1314 = vrot.lane.b32.xlu1 %v2280_v56, %s2753_s27  ;;  %v637_v17 = vsel %vm2962_vm5, %v632_v42, %v636_v19  ;;  %v642_v21 = vrot.slane %v641_v46, 4  ;;  %v816_v51 = vrot.slane %v3091_v5, 5  ;;  %v819_v52 = vrot.slane %v3103_v20, 5  ;;  %v3146_v56 = vld [vmem:[%s2871_s14 + $0x44] sm:$0x1] }
  0x5f   : > { %v671_v53 = vsel %vm2962_vm5, %v666_v44, %v670_v45  ;;  %v827_v55 = vsel %vm2915_vm2, %v825_v50, %v826_v60  ;;  %v957_v58 = vshrl.u32 %v3112_v47, 16  ;;  %v960_v61 = vshll.u32 %v3112_v47, 16  ;;  %v3167_v45 = vld [vmem:[%s2871_s14 + $0x38] sm:$0x1] }
  0x60   : > { %v2288_v63 = vcombine.low %v661_v48, %v671_v53  ;;  %v647_v0 = vsel %vm2962_vm5, %v642_v21, %v646_v36  ;;  %v2296_v2 = vcombine.low %v824_v49, %v827_v55  ;;  %v817_v4 = vsel %vm2915_vm2, %v2205_v43, %v816_v51 }
  0x61   : > { %v2287_v54 = vcombine.low %v637_v17, %v647_v0  ;;  %v818_v5 = vrot.slane %v816_v51, 4  ;;  %v959_v6 = vrot.slane %v957_v58, 4  ;;  %v962_v35 = vrot.slane %v960_v61, 5 }
  0x62   : > { %1354 = vrot.lane.b32.xlu1 %v2288_v63, %s2758_s13  ;;  %v970_v8 = vshrl.u32 %v3129_v57, 16  ;;  %v2304_v10 = vcombine.low %v3112_v47, %v3129_v57  ;;  %v933_v11 = vshrl.u32 %v2217_v62, 16  ;;  %v936_v12 = vshll.u32 %v2217_v62, 16 }
  0x63   : > { %1352 = vrot.lane.b32.xlu0 %v2287_v54, %s2758_s13  ;;  %v820_v14 = vsel %vm2915_vm2, %v818_v5, %v819_v52  ;;  %v946_v15 = vshrl.u32 %v3139_v41, 16  ;;  %v2303_v1 = vcombine.low %v2217_v62, %v3139_v41  ;;  %v963_v3 = vor.u32 %v962_v35, %v959_v6  ;;  %v3180_v52 = vld [vmem:[%s2871_s14 + $0x3c] sm:$0xf]  ;;  %v3186_v62 = vld [vmem:[%s2871_s14 + $0x40] sm:$0xf] }
  0x64   : > { %v2295_v16 = vcombine.low %v817_v4, %v820_v14  ;;  %v935_v20 = vrot.slane %v933_v11, 4  ;;  %v938_v27 = vrot.slane %v936_v12, 5  ;;  %v966_v13 = vshll.u32 %v3129_v57, 16  ;;  %v259_v54 = vld [vmem:[%s2871_s14 + $0x44] sm:$0x1] }
  0x65   : > { %v964_v9 = vrot.slane %v963_v3, 4  ;;  %v972_v32 = vrot.slane %v970_v8, 4  ;;  %v976_v40 = vshll.u32 %v3146_v56, 16  ;;  %v942_v22 = vshll.u32 %v3139_v41, 16  ;;  %v2240_v14 = vld [vmem:[%s2871_s14 + $0x3c] sm:$0xe] }
  0x66   : > { %1394 = vrot.lane.b32.xlu1 %v2296_v2, %s2755_s5  ;;  %v968_v23 = vrot.slane %v966_v13, 5  ;;  %v939_v24 = vor.u32 %v938_v27, %v935_v20  ;;  %v948_v29 = vrot.slane %v946_v15, 4  ;;  %v952_v30 = vshll.u32 %v3154_v18, 16 }
  0x67   : > { %1392 = vrot.lane.b32.xlu0 %v2295_v16, %s2755_s5  ;;  %v978_v26 = vrot.slane %v976_v40, 5  ;;  %v944_v28 = vrot.slane %v942_v22, 5  ;;  %v362_v31 = vshrl.u32 %v246_v7, 16  ;;  %v365_v19 = vshll.u32 %v246_v7, 16  ;;  %v462_v7 = vld [vmem:[%s2871_s14 + $0x3c] sm:$0xe] }
  0x68   : > { %v969_v33 = vsel %vm2962_vm5, %v964_v9, %v968_v23  ;;  %v973_v34 = vor.u32 %v972_v32, %v968_v23  ;;  %v940_v25 = vrot.slane %v939_v24, 4  ;;  %v954_v36 = vrot.slane %v952_v30, 5  ;;  %v461_v23 = vld [vmem:[%s2871_s14 + $0x30] sm:$0xe] }
  0x69   : > { %v949_v42 = vor.u32 %v948_v29, %v944_v28  ;;  %v364_v46 = vrot.slane %v362_v31, 4  ;;  %v367_v60 = vrot.slane %v365_v19, 5  ;;  %v371_v43 = vshll.u32 %v3163_v59, 16 }
  0x6a   : > { %1442 = vrot.lane.b32.xlu1 %v2304_v10, %s2754_s30  ;;  %v974_v47 = vrot.slane %v973_v34, 4  ;;  %v945_v48 = vsel %vm2962_vm5, %v940_v25, %v944_v28  ;;  %v375_v44 = vshrl.u32 %v3163_v59, 16  ;;  %v381_v49 = vshll.u32 %v3167_v45, 16  ;;  %v3214_v34 = vld [vmem:[%s2871_s14 + $0x48] sm:$0xf] }
  0x6b   : > { %1440 = vrot.lane.b32.xlu0 %v2303_v1, %s2754_s30  ;;  %v950_v50 = vrot.slane %v949_v42, 4  ;;  %v368_v17 = vor.u32 %v367_v60, %v364_v46  ;;  %v373_v21 = vrot.slane %v371_v43, 5  ;;  %v2247_v51 = vrot.slane %v2239_v38, 9 }
  0x6c   : > { %v979_v53 = vsel %vm2962_vm5, %v974_v47, %v978_v26  ;;  %v377_v55 = vrot.slane %v375_v44, 4  ;;  %v383_v58 = vrot.slane %v381_v49, 5  ;;  %v1124_v61 = vrot.slane %v3139_v41, 5  ;;  %v2182_v44 = vld [vmem:[%s2871_s14 + $0x4c] sm:$0xf] }
  0x6d   : > { %v2312_v63 = vcombine.low %v969_v33, %v979_v53  ;;  %v955_v0 = vsel %vm2962_vm5, %v950_v50, %v954_v36  ;;  %v369_v2 = vrot.slane %v368_v17, 4  ;;  %v1127_v4 = vrot.slane %v3154_v18, 5  ;;  %v2179_v50 = vld [vmem:[%s2871_s14 + $0x3c] sm:$0xf]  ;;  %v3237_v53 = vld [vmem:[%s2871_s14 + $0x40] sm:$0xf] }
  0x6e   : > { %v2311_v5 = vcombine.low %v945_v48, %v955_v0  ;;  %v378_v6 = vor.u32 %v377_v55, %v373_v21  ;;  %v1125_v35 = vsel %vm2915_vm2, %v2247_v51, %v1124_v61  ;;  %v1126_v8 = vrot.slane %v1124_v61, 4 }
  0x6f   : > { %1482 = vrot.lane.b32.xlu1 %v2312_v63, %s2759_s9  ;;  %v374_v41 = vsel %vm2962_vm5, %v369_v2, %v373_v21  ;;  %v386_v10 = vshrl.u32 %v3180_v52, 16  ;;  %v389_v11 = vshll.u32 %v3180_v52, 16  ;;  %v395_v12 = vshll.u32 %v3186_v62, 16 }
  0x70   : > { %1480 = vrot.lane.b32.xlu0 %v2311_v5, %s2759_s9  ;;  %v379_v15 = vrot.slane %v378_v6, 4  ;;  %v1128_v1 = vsel %vm2915_vm2, %v1126_v8, %v1127_v4  ;;  %v399_v3 = vshrl.u32 %v3186_v62, 16  ;;  %v405_v18 = vshll.u32 %v259_v54, 16 }
  0x71   : > { %v2319_v16 = vcombine.low %v1125_v35, %v1128_v1  ;;  %v388_v20 = vrot.slane %v386_v10, 4  ;;  %v391_v27 = vrot.slane %v389_v11, 5  ;;  %v397_v13 = vrot.slane %v395_v12, 5 }
  0x72   : > { %v384_v9 = vsel %vm2962_vm5, %v379_v15, %v383_v58  ;;  %v401_v32 = vrot.slane %v399_v3, 4  ;;  %v407_v40 = vrot.slane %v405_v18, 5  ;;  %v2248_v22 = vrot.slane %v2240_v14, 9  ;;  %v2200_v15 = vld [vmem:[%s2871_s14 + $0x48] sm:$0xe] }
  0x73   : > { %v2265_v24 = vcombine.low %v374_v41, %v384_v9  ;;  %v392_v29 = vor.u32 %v391_v27, %v388_v20  ;;  %v1131_v30 = vrot.slane %v3129_v57, 5  ;;  %v1134_v26 = vrot.slane %v3146_v56, 5  ;;  %v3249_v41 = vld [vmem:[%s2871_s14 + $0x44] sm:$0x1]  ;;  %v2199_v9 = vld [vmem:[%s2871_s14 + $0x3c] sm:$0xe] }
  0x74   : > { %1520 = vrot.lane.b32.xlu0 %v2319_v16, %s2760_s10  ;;  %v402_v28 = vor.u32 %v401_v32, %v397_v13  ;;  %v2166_v31 = vrot.slane %v462_v7, 9  ;;  %v529_v19 = vrot.slane %v3186_v62, 5  ;;  %v532_v33 = vrot.slane %v259_v54, 5  ;;  %v2192_v54 = vld [vmem:[%s2871_s14 + $0x50] sm:$0x1] }
  0x75   : > { %1228 = vrot.lane.b32.xlu1 %v2265_v24, %s3765_s8  ;;  %v393_v25 = vrot.slane %v392_v29, 4  ;;  %v1132_v36 = vsel %vm2915_vm2, %v2248_v22, %v1131_v30  ;;  %v1133_v57 = vrot.slane %v1131_v30, 4  ;;  %v2165_v56 = vrot.slane %v461_v23, 9 }
  0x76   : > { %v403_v38 = vrot.slane %v402_v28, 4  ;;  %v530_v42 = vsel %vm2915_vm2, %v2166_v31, %v529_v19  ;;  %v531_v46 = vrot.slane %v529_v19, 4  ;;  %v522_v60 = vrot.slane %v3163_v59, 5 }
  0x77   : > { %v398_v43 = vsel %vm2962_vm5, %v393_v25, %v397_v13  ;;  %v1135_v47 = vsel %vm2915_vm2, %v1133_v57, %v1134_v26  ;;  %v525_v48 = vrot.slane %v3167_v45, 5  ;;  %v697_v49 = vshrl.u32 %v3214_v34, 16 }
  0x78   : > { %v408_v17 = vsel %vm2962_vm5, %v403_v38, %v407_v40  ;;  %v2320_v21 = vcombine.low %v1132_v36, %v1135_v47  ;;  %v533_v59 = vsel %vm2915_vm2, %v531_v46, %v532_v33  ;;  %v523_v51 = vsel %vm2915_vm2, %v2165_v56, %v522_v60 }
  0x79   : > { %v2266_v55 = vcombine.low %v398_v43, %v408_v17  ;;  %v2274_v45 = vcombine.low %v530_v42, %v533_v59  ;;  %v524_v58 = vrot.slane %v522_v60, 4  ;;  %v699_v61 = vrot.slane %v697_v49, 4 }
  0x7a   : > { %1522 = vrot.lane.b32.xlu0 %v2320_v21, %s2760_s10  ;;  %v700_v63 = vshll.u32 %v3214_v34, 16  ;;  %v710_v0 = vshrl.u32 %v2182_v44, 16  ;;  %v2282_v2 = vcombine.low %v3214_v34, %v2182_v44  ;;  %v673_v4 = vshrl.u32 %v2179_v50, 16  ;;  %v3258_v34 = vld [vmem:[%s2871_s14 + $0x54] sm:$0xf] }
  0x7b   : > { %1230 = vrot.lane.b32.xlu1 %v2266_v55, %s3765_s8  ;;  %v526_v5 = vsel %vm2915_vm2, %v524_v58, %v525_v48  ;;  %v676_v6 = vshll.u32 %v2179_v50, 16  ;;  %v686_v35 = vshrl.u32 %v3237_v53, 16  ;;  %v2281_v8 = vcombine.low %v2179_v50, %v3237_v53  ;;  %v3275_v48 = vld [vmem:[%s2871_s14 + $0x58] sm:$0xf]  ;;  %v2221_v50 = vld [vmem:[%s2871_s14 + $0x48] sm:$0xf] }
  0x7c   : > { %v2273_v10 = vcombine.low %v523_v51, %v526_v5  ;;  %v702_v11 = vrot.slane %v700_v63, 5  ;;  %v675_v12 = vrot.slane %v673_v4, 4  ;;  %v706_v14 = vshll.u32 %v2182_v44, 16 }
  0x7d   : > { %v678_v1 = vrot.slane %v676_v6, 5  ;;  %v712_v3 = vrot.slane %v710_v0, 4  ;;  %v716_v18 = vshll.u32 %v2192_v54, 16  ;;  %v682_v16 = vshll.u32 %v3237_v53, 16 }
  0x7e   : > { %1268 = vrot.lane.b32.xlu0 %v2273_v10, %s2756_s6  ;;  %v703_v20 = vor.u32 %v702_v11, %v699_v61  ;;  %v708_v27 = vrot.slane %v706_v14, 5  ;;  %v688_v13 = vrot.slane %v686_v35, 4  ;;  %v692_v7 = vshll.u32 %v3249_v41, 16 }
  0x7f   : > { %1270 = vrot.lane.b32.xlu1 %v2274_v45, %s2756_s6  ;;  %v718_v32 = vrot.slane %v716_v18, 5  ;;  %v679_v40 = vor.u32 %v678_v1, %v675_v12  ;;  %v684_v22 = vrot.slane %v682_v16, 5  ;;  %v2208_v23 = vrot.slane %v2200_v15, 9  ;;  %v3304_v15 = vld [vmem:[%s2871_s14 + $0x48] sm:$0xf] }
  0x80   : > { %v704_v24 = vrot.slane %v703_v20, 4  ;;  %v713_v29 = vor.u32 %v712_v3, %v708_v27  ;;  %v694_v30 = vrot.slane %v692_v7, 5  ;;  %v837_v26 = vrot.slane %v2182_v44, 5 }
  0x81   : > { %v680_v28 = vrot.slane %v679_v40, 4  ;;  %v689_v31 = vor.u32 %v688_v13, %v684_v22  ;;  %v840_v19 = vrot.slane %v2192_v54, 5  ;;  %v2207_v33 = vrot.slane %v2199_v9, 9  ;;  %v3292_v54 = vld [vmem:[%s2871_s14 + $0x5c] sm:$0x1] }
  0x82   : > { %1316 = vrot.lane.b32.xlu0 %v2281_v8, %s2753_s27  ;;  %v709_v25 = vsel %vm2962_vm5, %v704_v24, %v708_v27  ;;  %v714_v36 = vrot.slane %v713_v29, 4  ;;  %v838_v57 = vsel %vm2915_vm2, %v2208_v23, %v837_v26  ;;  %v839_v56 = vrot.slane %v837_v26, 4  ;;  %v3311_v9 = vld [vmem:[%s2871_s14 + $0x4c] sm:$0xf] }
  0x83   : > { %1318 = vrot.lane.b32.xlu1 %v2282_v2, %s2753_s27  ;;  %v685_v38 = vsel %vm2962_vm5, %v680_v28, %v684_v22  ;;  %v690_v42 = vrot.slane %v689_v31, 4  ;;  %v830_v46 = vrot.slane %v3237_v53, 5  ;;  %v833_v60 = vrot.slane %v3249_v41, 5  ;;  %v3285_v53 = vld [vmem:[%s2871_s14 + $0x4c] sm:$0xf] }
  0x84   : > { %v719_v43 = vsel %vm2962_vm5, %v714_v36, %v718_v32  ;;  %v841_v47 = vsel %vm2915_vm2, %v839_v56, %v840_v19  ;;  %v1005_v44 = vshrl.u32 %v3258_v34, 16  ;;  %v1008_v49 = vshll.u32 %v3258_v34, 16  ;;  %v3300_v41 = vld [vmem:[%s2871_s14 + $0x50] sm:$0x1]  ;;  %v2241_v31 = vld [vmem:[%s2871_s14 + $0x48] sm:$0xe] }
  0x85   : > { %v2290_v17 = vcombine.low %v709_v25, %v719_v43  ;;  %v695_v21 = vsel %vm2962_vm5, %v690_v42, %v694_v30  ;;  %v2298_v59 = vcombine.low %v838_v57, %v841_v47  ;;  %v831_v51 = vsel %vm2915_vm2, %v2207_v33, %v830_v46  ;;  %v3315_v22 = vld [vmem:[%s2871_s14 + $0x50] sm:$0x1]  ;;  %v3330_v47 = vld [vmem:[%s2871_s14 + $0x54] sm:$0xf] }
  0x86   : > { %v2289_v55 = vcombine.low %v685_v38, %v695_v21  ;;  %v832_v45 = vrot.slane %v830_v46, 4  ;;  %v1007_v58 = vrot.slane %v1005_v44, 4  ;;  %v1010_v61 = vrot.slane %v1008_v49, 5  ;;  %v3336_v21 = vld [vmem:[%s2871_s14 + $0x58] sm:$0xf] }
  0x87   : > { %1358 = vrot.lane.b32.xlu1 %v2290_v17, %s2758_s13  ;;  %v1018_v63 = vshrl.u32 %v3275_v48, 16  ;;  %v2306_v0 = vcombine.low %v3258_v34, %v3275_v48  ;;  %v981_v2 = vshrl.u32 %v2221_v50, 16  ;;  %v984_v4 = vshll.u32 %v2221_v50, 16 }
  0x88   : > { %1356 = vrot.lane.b32.xlu0 %v2289_v55, %s2758_s13  ;;  %v834_v5 = vsel %vm2915_vm2, %v832_v45, %v833_v60  ;;  %v994_v6 = vshrl.u32 %v3285_v53, 16  ;;  %v2305_v35 = vcombine.low %v2221_v50, %v3285_v53  ;;  %v1011_v8 = vor.u32 %v1010_v61, %v1007_v58  ;;  %v261_v58 = vld [vmem:[%s2871_s14 + $0x5c] sm:$0x1] }
  0x89   : > { %v2297_v10 = vcombine.low %v831_v51, %v834_v5  ;;  %v983_v11 = vrot.slane %v981_v2, 4  ;;  %v986_v12 = vrot.slane %v984_v4, 5  ;;  %v1014_v14 = vshll.u32 %v3275_v48, 16 }
  0x8a   : > { %v1012_v1 = vrot.slane %v1011_v8, 4  ;;  %v1020_v3 = vrot.slane %v1018_v63, 4  ;;  %v1024_v18 = vshll.u32 %v3292_v54, 16  ;;  %v990_v16 = vshll.u32 %v3285_v53, 16 }
  0x8b   : > { %1398 = vrot.lane.b32.xlu1 %v2298_v59, %s2755_s5  ;;  %v1016_v20 = vrot.slane %v1014_v14, 5  ;;  %v987_v27 = vor.u32 %v986_v12, %v983_v11  ;;  %v996_v13 = vrot.slane %v994_v6, 4  ;;  %v1000_v7 = vshll.u32 %v3300_v41, 16 }
  0x8c   : > { %1396 = vrot.lane.b32.xlu0 %v2297_v10, %s2755_s5  ;;  %v1026_v32 = vrot.slane %v1024_v18, 5  ;;  %v992_v40 = vrot.slane %v990_v16, 5  ;;  %v410_v23 = vshrl.u32 %v3304_v15, 16  ;;  %v413_v24 = vshll.u32 %v3304_v15, 16  ;;  %v464_v18 = vld [vmem:[%s2871_s14 + $0x54] sm:$0xe] }
  0x8d   : > { %v1017_v29 = vsel %vm2962_vm5, %v1012_v1, %v1016_v20  ;;  %v1021_v30 = vor.u32 %v1020_v3, %v1016_v20  ;;  %v988_v26 = vrot.slane %v987_v27, 4  ;;  %v1002_v28 = vrot.slane %v1000_v7, 5  ;;  %v463_v7 = vld [vmem:[%s2871_s14 + $0x48] sm:$0xe] }
  0x8e   : > { %v997_v19 = vor.u32 %v996_v13, %v992_v40  ;;  %v412_v33 = vrot.slane %v410_v23, 4  ;;  %v415_v34 = vrot.slane %v413_v24, 5  ;;  %v419_v25 = vshll.u32 %v3311_v9, 16 }
  0x8f   : > { %1446 = vrot.lane.b32.xlu1 %v2306_v0, %s2754_s30  ;;  %v1022_v36 = vrot.slane %v1021_v30, 4  ;;  %v993_v57 = vsel %vm2962_vm5, %v988_v26, %v992_v40  ;;  %v423_v56 = vshrl.u32 %v3311_v9, 16  ;;  %v429_v38 = vshll.u32 %v3315_v22, 16 }
  0x90   : > { %1444 = vrot.lane.b32.xlu0 %v2305_v35, %s2754_s30  ;;  %v998_v42 = vrot.slane %v997_v19, 4  ;;  %v416_v46 = vor.u32 %v415_v34, %v412_v33  ;;  %v421_v60 = vrot.slane %v419_v25, 5  ;;  %v2249_v43 = vrot.slane %v2241_v31, 9  ;;  %v2242_v35 = vld [vmem:[%s2871_s14 + $0x54] sm:$0xe] }
  0x91   : > { %v1027_v44 = vsel %vm2962_vm5, %v1022_v36, %v1026_v32  ;;  %v425_v49 = vrot.slane %v423_v56, 4  ;;  %v431_v50 = vrot.slane %v429_v38, 5  ;;  %v1138_v17 = vrot.slane %v3285_v53, 5  ;;  %v3364_v31 = vld [vmem:[%s2871_s14 + $0x60] sm:$0xf] }
  0x92   : > { %v2314_v59 = vcombine.low %v1017_v29, %v1027_v44  ;;  %v1003_v51 = vsel %vm2962_vm5, %v998_v42, %v1002_v28  ;;  %v417_v55 = vrot.slane %v416_v46, 4  ;;  %v1141_v45 = vrot.slane %v3300_v41, 5  ;;  %v2183_v44 = vld [vmem:[%s2871_s14 + $0x54] sm:$0xf] }
  0x93   : > { %v2313_v61 = vcombine.low %v993_v57, %v1003_v51  ;;  %v426_v63 = vor.u32 %v425_v49, %v421_v60  ;;  %v1139_v0 = vsel %vm2915_vm2, %v2249_v43, %v1138_v17  ;;  %v1140_v2 = vrot.slane %v1138_v17, 4  ;;  %v3389_v51 = vld [vmem:[%s2871_s14 + $0x58] sm:$0xf] }
  0x94   : > { %1486 = vrot.lane.b32.xlu1 %v2314_v59, %s2759_s9  ;;  %v422_v53 = vsel %vm2962_vm5, %v417_v55, %v421_v60  ;;  %v434_v4 = vshrl.u32 %v3330_v47, 16  ;;  %v437_v5 = vshll.u32 %v3330_v47, 16  ;;  %v443_v6 = vshll.u32 %v3336_v21, 16  ;;  %v2186_v60 = vld [vmem:[%s2871_s14 + $0x64] sm:$0xf] }
  0x95   : > { %1484 = vrot.lane.b32.xlu0 %v2313_v61, %s2759_s9  ;;  %v427_v8 = vrot.slane %v426_v63, 4  ;;  %v1142_v41 = vsel %vm2915_vm2, %v1140_v2, %v1141_v45  ;;  %v447_v10 = vshrl.u32 %v3336_v21, 16  ;;  %v453_v11 = vshll.u32 %v261_v58, 16 }
  0x96   : > { %v2321_v12 = vcombine.low %v1139_v0, %v1142_v41  ;;  %v436_v14 = vrot.slane %v434_v4, 4  ;;  %v439_v1 = vrot.slane %v437_v5, 5  ;;  %v445_v3 = vrot.slane %v443_v6, 5  ;;  %v2194_v4 = vld [vmem:[%s2871_s14 + $0x68] sm:$0x1] }
  0x97   : > { %v432_v16 = vsel %vm2962_vm5, %v427_v8, %v431_v50  ;;  %v449_v20 = vrot.slane %v447_v10, 4  ;;  %v455_v27 = vrot.slane %v453_v11, 5  ;;  %v2250_v13 = vrot.slane %v2242_v35, 9  ;;  %v3405_v10 = vld [vmem:[%s2871_s14 + $0x5c] sm:$0x1] }
  0x98   : > { %v2267_v32 = vcombine.low %v422_v53, %v432_v16  ;;  %v440_v40 = vor.u32 %v439_v1, %v436_v14  ;;  %v1145_v23 = vrot.slane %v3275_v48, 5  ;;  %v1148_v24 = vrot.slane %v3292_v54, 5  ;;  %v3366_v19 = vpop.permute.xlu1 %1310 }
  0x99   : > { %1524 = vrot.lane.b32.xlu0 %v2321_v12, %s2760_s10  ;;  %v450_v29 = vor.u32 %v449_v20, %v445_v3  ;;  %v2168_v30 = vrot.slane %v464_v18, 9  ;;  %v543_v26 = vrot.slane %v3336_v21, 5  ;;  %v546_v28 = vrot.slane %v261_v58, 5  ;;  %v3391_v55 = vpop.permute.xlu0 %1308 }
  0x9a   : > { %1232 = vrot.lane.b32.xlu1 %v2267_v32, %s3765_s8  ;;  %v441_v33 = vrot.slane %v440_v40, 4  ;;  %v1146_v48 = vsel %vm2915_vm2, %v2250_v13, %v1145_v23  ;;  %v1147_v54 = vrot.slane %v1145_v23, 4  ;;  %v2167_v34 = vrot.slane %v463_v7, 9  ;;  %v2201_v23 = vld [vmem:[%s2871_s14 + $0x54] sm:$0xe] }
  0x9b   : > { %v451_v25 = vrot.slane %v450_v29, 4  ;;  %v544_v36 = vsel %vm2915_vm2, %v2168_v30, %v543_v26  ;;  %v545_v57 = vrot.slane %v543_v26, 4  ;;  %v536_v56 = vrot.slane %v3311_v9, 5 }
  0x9c   : > { %v446_v38 = vsel %vm2962_vm5, %v441_v33, %v445_v3  ;;  %v1149_v42 = vsel %vm2915_vm2, %v1147_v54, %v1148_v24  ;;  %v539_v46 = vrot.slane %v3315_v22, 5  ;;  %v745_v43 = vshrl.u32 %v3364_v31, 16  ;;  %v3397_v5 = vpop.permute.xlu1 %1438  ;;  %v2202_v3 = vld [vmem:[%s2871_s14 + $0x60] sm:$0xe] }
  0x9d   : > { %v456_v49 = vsel %vm2962_vm5, %v451_v25, %v455_v27  ;;  %v2322_v50 = vcombine.low %v1146_v48, %v1149_v42  ;;  %v547_v17 = vsel %vm2915_vm2, %v545_v57, %v546_v28  ;;  %v537_v59 = vsel %vm2915_vm2, %v2167_v34, %v536_v56 }
  0x9e   : > { %v2268_v22 = vcombine.low %v446_v38, %v456_v49  ;;  %v2276_v45 = vcombine.low %v544_v36, %v547_v17  ;;  %v538_v58 = vrot.slane %v536_v56, 4  ;;  %v747_v61 = vrot.slane %v745_v43, 4  ;;  %v3412_v24 = vpop.permute.xlu0 %1436  ;;  %v3418_v38 = vld [vmem:[%s2871_s14 + $0x6c] sm:$0xf] }
  0x9f   : > { %1526 = vrot.lane.b32.xlu0 %v2322_v50, %s2760_s10  ;;  %v748_v63 = vshll.u32 %v3364_v31, 16  ;;  %v758_v0 = vshrl.u32 %v2186_v60, 16  ;;  %v2284_v2 = vcombine.low %v3364_v31, %v2186_v60  ;;  %v721_v53 = vshrl.u32 %v2183_v44, 16 }
  0xa0   : > { %1234 = vrot.lane.b32.xlu1 %v2268_v22, %s3765_s8  ;;  %v540_v6 = vsel %vm2915_vm2, %v538_v58, %v539_v46  ;;  %v724_v35 = vshll.u32 %v2183_v44, 16  ;;  %v734_v8 = vshrl.u32 %v3389_v51, 16  ;;  %v2283_v41 = vcombine.low %v2183_v44, %v3389_v51 }
  0xa1   : > { %v2275_v11 = vcombine.low %v537_v59, %v540_v6  ;;  %v750_v12 = vrot.slane %v748_v63, 5  ;;  %v723_v14 = vrot.slane %v721_v53, 4  ;;  %v754_v1 = vshll.u32 %v2186_v60, 16  ;;  %v2225_v63 = vld [vmem:[%s2871_s14 + $0x60] sm:$0xf] }
  0xa2   : > { %v726_v18 = vrot.slane %v724_v35, 5  ;;  %v760_v16 = vrot.slane %v758_v0, 4  ;;  %v764_v20 = vshll.u32 %v2194_v4, 16  ;;  %v730_v27 = vshll.u32 %v3389_v51, 16 }
  0xa3   : > { %1272 = vrot.lane.b32.xlu0 %v2275_v11, %s2756_s6  ;;  %v751_v13 = vor.u32 %v750_v12, %v747_v61  ;;  %v756_v7 = vrot.slane %v754_v1, 5  ;;  %v736_v32 = vrot.slane %v734_v8, 4  ;;  %v740_v40 = vshll.u32 %v3405_v10, 16 }
  0xa4   : > { %1274 = vrot.lane.b32.xlu1 %v2276_v45, %s2756_s6  ;;  %v766_v29 = vrot.slane %v764_v20, 5  ;;  %v727_v30 = vor.u32 %v726_v18, %v723_v14  ;;  %v732_v26 = vrot.slane %v730_v27, 5  ;;  %v2210_v28 = vrot.slane %v2202_v3, 9  ;;  %v2228_v45 = vld [vmem:[%s2871_s14 + $0x70] sm:$0xf]  ;;  %v3438_v0 = vpop.permute.xlu0 %1388 }
  0xa5   : > { %v752_v31 = vrot.slane %v751_v13, 4  ;;  %v761_v33 = vor.u32 %v760_v16, %v756_v7  ;;  %v742_v48 = vrot.slane %v740_v40, 5  ;;  %v851_v54 = vrot.slane %v2186_v60, 5  ;;  %v3415_v34 = vpop.permute.xlu1 %1260  ;;  %v2236_v3 = vld [vmem:[%s2871_s14 + $0x74] sm:$0x1] }
  0xa6   : > { %v728_v25 = vrot.slane %v727_v30, 4  ;;  %v737_v36 = vor.u32 %v736_v32, %v732_v26  ;;  %v854_v57 = vrot.slane %v2194_v4, 5  ;;  %v2209_v56 = vrot.slane %v2201_v23, 9  ;;  %v3445_v4 = vld [vmem:[%s2871_s14 + $0x64] sm:$0xf] }
  0xa7   : > { %1320 = vrot.lane.b32.xlu0 %v2283_v41, %s2753_s27  ;;  %v757_v42 = vsel %vm2962_vm5, %v752_v31, %v756_v7  ;;  %v762_v46 = vrot.slane %v761_v33, 4  ;;  %v852_v43 = vsel %vm2915_vm2, %v2210_v28, %v851_v54  ;;  %v853_v60 = vrot.slane %v851_v54, 4  ;;  %v2235_v13 = vld [vmem:[%s2871_s14 + $0x68] sm:$0x1] }
  0xa8   : > { %1322 = vrot.lane.b32.xlu1 %v2284_v2, %s2753_s27  ;;  %v733_v44 = vsel %vm2962_vm5, %v728_v25, %v732_v26  ;;  %v738_v49 = vrot.slane %v737_v36, 4  ;;  %v844_v50 = vrot.slane %v3389_v51, 5  ;;  %v847_v17 = vrot.slane %v3405_v10, 5 }
  0xa9   : > { %v767_v59 = vsel %vm2962_vm5, %v762_v46, %v766_v29  ;;  %v855_v22 = vsel %vm2915_vm2, %v853_v60, %v854_v57  ;;  %v1053_v58 = vshrl.u32 %v3418_v38, 16  ;;  %v1056_v61 = vshll.u32 %v3418_v38, 16  ;;  %v3447_v6 = vpop.permute.xlu1 %1262  ;;  %v2244_v29 = vld [vmem:[%s2871_s14 + $0x6c] sm:$0xe] }
  0xaa   : > { %v2292_v2 = vcombine.low %v757_v42, %v767_v59  ;;  %v743_v51 = vsel %vm2962_vm5, %v738_v49, %v742_v48  ;;  %v845_v53 = vsel %vm2915_vm2, %v2209_v56, %v844_v50  ;;  %v846_v8 = vrot.slane %v844_v50, 4 }
  0xab   : > { %v2291_v35 = vcombine.low %v733_v44, %v743_v51  ;;  %v1055_v41 = vrot.slane %v1053_v58, 4  ;;  %v1058_v10 = vrot.slane %v1056_v61, 5  ;;  %v2300_v11 = vcombine.low %v852_v43, %v855_v22  ;;  %v2243_v43 = vld [vmem:[%s2871_s14 + $0x60] sm:$0xe] }
  0xac   : > { %1362 = vrot.lane.b32.xlu1 %v2292_v2, %s2758_s13  ;;  %v1066_v12 = vshrl.u32 %v2228_v45, 16  ;;  %v1029_v14 = vshrl.u32 %v2225_v63, 16  ;;  %v1032_v1 = vshll.u32 %v2225_v63, 16  ;;  %v848_v18 = vsel %vm2915_vm2, %v846_v8, %v847_v17 }
  0xad   : > { %1360 = vrot.lane.b32.xlu0 %v2291_v35, %s2758_s13  ;;  %v2308_v16 = vcombine.low %v3418_v38, %v2228_v45  ;;  %v1042_v20 = vshrl.u32 %v3445_v4, 16  ;;  %v1059_v27 = vor.u32 %v1058_v10, %v1055_v41  ;;  %v2299_v7 = vcombine.low %v845_v53, %v848_v18  ;;  %v3460_v57 = vpop.permute.xlu1 %1390  ;;  %v2587_v41 = vld [vmem:[%s2871_s14 + $0x4] sm:$0xf]  ;;  %v2588_v10 = vld [vmem:[%s2871_s14] sm:$0xf] }
  0xae   : > { %v1031_v32 = vrot.slane %v1029_v14, 4  ;;  %v1034_v40 = vrot.slane %v1032_v1, 5  ;;  %v1062_v23 = vshll.u32 %v2228_v45, 16  ;;  %v1068_v26 = vrot.slane %v1066_v12, 4 }
  0xaf   : > { %v1060_v30 = vrot.slane %v1059_v27, 4  ;;  %v1072_v28 = vshll.u32 %v2236_v3, 16  ;;  %v1038_v31 = vshll.u32 %v3445_v4, 16  ;;  %v1221_v33 = vpop.permute.xlu0 %1220  ;;  %v1044_v25 = vrot.slane %v1042_v20, 4 }
  0xb0   : > { %1402 = vrot.lane.b32.xlu1 %v2300_v11, %s2755_s5  ;;  %v1064_v48 = vrot.slane %v1062_v23, 5  ;;  %v1035_v54 = vor.u32 %v1034_v40, %v1031_v32  ;;  %v1048_v36 = vshll.u32 %v2235_v13, 16  ;;  %v2307_v56 = vcombine.low %v2225_v63, %v3445_v4  ;;  %v2590_v32 = vld [vmem:[%s2871_s14 + $0xc] sm:$0xf] }
  0xb1   : > { %1400 = vrot.lane.b32.xlu0 %v2299_v7, %s2755_s5  ;;  %v1040_v38 = vrot.slane %v1038_v31, 5  ;;  %v2252_v42 = vrot.slane %v2244_v29, 9  ;;  %v1159_v46 = vrot.slane %v2228_v45, 5  ;;  %v1074_v49 = vrot.slane %v1072_v28, 5  ;;  %v2589_v7 = vld [vmem:[%s2871_s14 + $0x10] sm:$0xf] }
  0xb2   : > { %v1065_v60 = vsel %vm2962_vm5, %v1060_v30, %v1064_v48  ;;  %v1069_v44 = vor.u32 %v1068_v26, %v1064_v48  ;;  %v1036_v50 = vrot.slane %v1035_v54, 4  ;;  %v1050_v59 = vrot.slane %v1048_v36, 5 }
  0xb3   : > { %v1045_v17 = vor.u32 %v1044_v25, %v1040_v38  ;;  %v1161_v22 = vrot.slane %v1159_v46, 4  ;;  %v1162_v58 = vrot.slane %v2236_v3, 5  ;;  %v1223_v61 = vpop.permute.xlu0 %1222  ;;  %v1160_v45 = vsel %vm2915_vm2, %v2252_v42, %v1159_v46 }
  0xb4   : > { %1450 = vrot.lane.b32.xlu1 %v2308_v16, %s2754_s30  ;;  %v1070_v63 = vrot.slane %v1069_v44, 4  ;;  %v2251_v2 = vrot.slane %v2243_v43, 9  ;;  %v1152_v51 = vrot.slane %v3445_v4, 5  ;;  %v1041_v53 = vsel %vm2962_vm5, %v1036_v50, %v1040_v38  ;;  %v1351_v3 = vpop.permute.xlu1 %1350 }
  0xb5   : > { %1448 = vrot.lane.b32.xlu0 %v2307_v56, %s2754_s30  ;;  %v1046_v35 = vrot.slane %v1045_v17, 4  ;;  %v1155_v8 = vrot.slane %v2235_v13, 5  ;;  %v2253_v11 = vcombine.low %v2588_v10, %v2587_v41  ;;  %v1163_v14 = vsel %vm2915_vm2, %v1161_v22, %v1162_v58 }
  0xb6   : > { %v1075_v12 = vsel %vm2962_vm5, %v1070_v63, %v1074_v49  ;;  %v1153_v4 = vsel %vm2915_vm2, %v2251_v2, %v1152_v51  ;;  %v1154_v1 = vrot.slane %v1152_v51, 4  ;;  %v2254_v40 = vcombine.low %v2590_v32, %v2589_v7  ;;  %v2592_v2 = vld [vmem:[%s2871_s14 + $0x1c] sm:$0xf] }
  0xb7   : > { %v2316_v18 = vcombine.low %v1065_v60, %v1075_v12  ;;  %v1051_v16 = vsel %vm2962_vm5, %v1046_v35, %v1050_v59  ;;  %v1535_v13 = vsel %vm1532_vm6, %v2253_v11, %v1221_v33  ;;  %v1349_v23 = vpop.permute.xlu0 %1348  ;;  %v2324_v29 = vcombine.low %v1160_v45, %v1163_v14  ;;  %v2591_v45 = vld [vmem:[%s2871_s14 + $0x18] sm:$0xf]  ;;  %v2593_v11 = vld [vmem:[%s2871_s14 + $0x24] sm:$0xf]  ;;  %v2594_v12 = vld [vmem:[%s2871_s14 + $0x28] sm:$0xf] }
  0xb8   : > { %v2315_v20 = vcombine.low %v1041_v53, %v1051_v16  ;;  %v1156_v27 = vsel %vm2915_vm2, %v1154_v1, %v1155_v8  ;;  %v1559_v30 = vsel %vm1557_vm7, %v1535_v13, %v3415_v34  ;;  %v1538_v26 = vsel %vm1532_vm6, %v2254_v40, %v1223_v61 }
  0xb9   : > { %1490 = vrot.lane.b32.xlu1 %v2316_v18, %s2759_s9  ;;  %v2323_v37 = vcombine.low %v1153_v4, %v1156_v27  ;;  %v1576_v28 = vsel %vm1574_vm8, %v1559_v30, %v3391_v55  ;;  %v1561_v31 = vsel %vm1557_vm7, %v1538_v26, %v3447_v6  ;;  %v1715_v25 = vsel %vm1713_vm12, %v2581_v39, 0 }
  0xba   : > { %1488 = vrot.lane.b32.xlu0 %v2315_v20, %s2759_s9  ;;  %v1593_v34 = vsel %vm1591_vm9, %v1576_v28, %v1349_v23  ;;  %v1578_v33 = vsel %vm1574_vm8, %v1561_v31, %v3366_v19  ;;  %v1479_v54 = vpop.permute.xlu1 %1478  ;;  %2444 = vmatpush3.bf16.msra.mxu0 %v1715_v25  ;;  %v2260_v36 = vcombine.low %v3330_v47, %v3336_v21  ;;  %s1965_s9 = sadd.s32 %s2356_s12, %s2355_s11 }
  0xbb   : > { %v1610_v48 = vsel %vm1608_vm10, %v1593_v34, %v3438_v0  ;;  %v1595_v55 = vsel %vm1591_vm9, %v1578_v33, %v1351_v3  ;;  %v2259_v0 = vcombine.low %v3304_v15, %v3311_v9  ;;  %2466 = vmatpush3.bf16.msra.mxu1 %v1715_v25  ;;  %v2255_v51 = vcombine.low %v2591_v45, %v2592_v2  ;;  %s2357_s30 = sshll.u32 %s1965_s9, 6 }
  0xbc   : > { %v1627_v19 = vsel %vm1625_vm11, %v1610_v48, %v3412_v24  ;;  %v1612_v56 = vsel %vm1608_vm10, %v1595_v55, %v3460_v57  ;;  %v2256_v14 = vcombine.low %v2593_v11, %v2594_v12 }
  0xbd   : > { %1530 = vrot.lane.b32.xlu1 %v2324_v29, %s2760_s10  ;;  %v1629_v24 = vsel %vm1625_vm11, %v1612_v56, %v3397_v5  ;;  %v2595_v56 = vld [vmem:[%s2871_s14 + $0x30] sm:$0xf] }
  0xbe   : > { %1528 = vrot.lane.b32.xlu0 %v2323_v37, %s2760_s10  ;;  %v1477_v6 = vpop.permute.xlu0 %1476  ;;  %v1646_v60 = vsel %vm1642_vm13, %v1629_v24, %v1479_v54  ;;  %s2358_s10 = sshll.u32 %s2739_s19, 1 }
  0xbf   : > { %v1644_v38 = vsel %vm1642_vm13, %v1627_v19, %v1477_v6 }
  0xc1   : > { %v1225_v42 = vpop.permute.xlu1 %1224 }
  0xc2   : > { %v1517_v46 = vpop.permute.xlu0 %1516  ;;  %v1541_v8 = vsel %vm1532_vm6, %v2255_v51, %v1225_v42 }
  0xc3   : > { %v1661_v43 = vsel %vm1659_vm14, %v1644_v38, %v1517_v46  ;;  %v2596_v38 = vld [vmem:[%s2871_s14 + $0x34] sm:$0xf]  ;;  %s3594_s14 = sand.u32 1, %s2727_s16  }
  0xc4   : > { %2445 = vmatprep.mubr.msk.bf16.mxu0 %vm1696_vm15, %v1661_v43  ;;  %v2257_v42 = vcombine.low %v2595_v56, %v2596_v38  ;;  %s2154_s5 = sshll.u32 %s3594_s14, 6  ;;  %s2155_s13 = sshll.u32 %s3594_s14, 3 }
  0xc5   : > { %s3597_s6 = scalar_lea.vmem [#allocation2], %s2154_s5  ;;  %s3611_s5 = sadd.s32 %s2735_s18, %s2358_s10 }
  0xc6   : > { %s1968_s27 = sshll.u32 %s3597_s6, 4  ;;  %s3622_s18 = scalar_lea.hbm %s3761_s2, %s2357_s30  ;;  %s3617_s27 = int_to_ptr.vmem [resolvable:$true] %s1968_s27 }
  0xc7   : > { %v1519_v44 = vpop.permute.xlu0 %1518  ;;  %s2359_s12 = sshll.u32 %s3611_s5, 7  ;;  %s3626_s9 = scalar_lea.vmem [#allocation4], %s2155_s13 }
  0xc8   : > { %v1227_v49 = vpop.permute.xlu1 %1226  ;;  %v1663_v57 = vsel %vm1659_vm14, %v1646_v60, %v1519_v44  ;;  %s3630_s10 = scalar_lea.vmem [#allocation6], %s2155_s13  ;;  %s1943_s0 = scalar_lea.sflag [#allocation3], %s3594_s14 }
  0xc9   : > { %2446 = vmatmul.mubr.msk.bf16.vlgmr.msra.gmra.mrb[0].mxu0 %vm1696_vm15, %v1663_v57  ;;  %v1544_v20 = vsel %vm1532_vm6, %v2256_v14, %v1227_v49  ;;  %v2258_v49 = vcombine.low %v3180_v52, %v3186_v62  ;;  %s2597_s1 = scalar_lea.vmem %s3617_s27, 1024  ;;  %s2761_s30 = smov [#allocation2]  }
  0xca   : > { %p2598_p13 = scmp.ne.s32.totalorder %s3617_s27, %s2597_s1  ;;  %s2601_s19 = sshll.u32 %s2761_s30, 4  ;;  %s2602_s19 = int_to_ptr.vmem [resolvable:$false] %s2601_s19 }
  0xcb   : > { %v1265_v50 = vpop.permute.xlu0 %1264  ;;  %s2603_s11 = scalar_lea.vmem %s2602_s19, 2048  ;;  %p2604_p2 = scmp.lt.s32.totalorder %s3617_s27, %s2602_s19 }
  0xcc   : > { %v1267_v17 = vpop.permute.xlu1 %1266  ;;  %v1563_v41 = vsel %vm1557_vm7, %v1541_v8, %v1265_v50  ;;  %p2599_p0 = pnand %p2598_p13, %p2843_p3  ;;  %p2605_p4 = scmp.lt.s32.totalorder %s2603_s11, %s2597_s1 }
  0xcd   : > { %v1565_v7 = vsel %vm1557_vm7, %v1544_v20, %v1267_v17 }
  0xce   : > { %p2600_p1 = pneg %p2599_p0  ;;  %p2606_p5 = por %p2605_p4, %p2604_p2 }
  0xcf   : > { %v1313_v59 = vpop.permute.xlu0 %1312 }
  0xd0   : > { %v1315_v22 = vpop.permute.xlu1 %1314  ;;  %v1580_v4 = vsel %vm1574_vm8, %v1563_v41, %v1313_v59  ;;  %p2607_p6 = pnand %p2606_p5, %p2600_p1 }
  0xd1   : > { %v1582_v23 = vsel %vm1574_vm8, %v1565_v7, %v1315_v22 }
  0xd4   : > { %v1355_v58 = vpop.permute.xlu1 %1354 }
  0xd5   : > { %v1353_v61 = vpop.permute.xlu0 %1352  ;;  %v1599_v29 = vsel %vm1591_vm9, %v1582_v23, %v1355_v58 }
  0xd6   : > { %v1597_v3 = vsel %vm1591_vm9, %v1580_v4, %v1353_v61 }
  0xd8   : > { %v1395_v5 = vpop.permute.xlu1 %1394 }
  0xd9   : > { %v1393_v63 = vpop.permute.xlu0 %1392  ;;  %v1616_v30 = vsel %vm1608_vm10, %v1599_v29, %v1395_v5 }
  0xda   : > { %v1614_v18 = vsel %vm1608_vm10, %v1597_v3, %v1393_v63 }
  0xdc   : > { %v1443_v53 = vpop.permute.xlu1 %1442 }
  0xdd   : > { %v1441_v35 = vpop.permute.xlu0 %1440  ;;  %v1633_v39 = vsel %vm1625_vm11, %v1616_v30, %v1443_v53 }
  0xde   : > { %v1631_v16 = vsel %vm1625_vm11, %v1614_v18, %v1441_v35 }
  0xe1   : > { %v1483_v10 = vpop.permute.xlu1 %1482 }
  0xe2   : > { %v1481_v1 = vpop.permute.xlu0 %1480  ;;  %v1650_v37 = vsel %vm1642_vm13, %v1633_v39, %v1483_v10 }
  0xe3   : > { %v1648_v27 = vsel %vm1642_vm13, %v1631_v16, %v1481_v1 }
  0xe6   : > { %v1521_v13 = vpop.permute.xlu0 %1520 }
  0xe7   : > { %v1229_v32 = vpop.permute.xlu1 %1228  ;;  %v1665_v40 = vsel %vm1659_vm14, %v1648_v27, %v1521_v13 }
  0xe8   : > { %2449 = vmatprep.mubr.msk.bf16.mxu0 %vm1696_vm15, %v1665_v40  ;;  %v1547_v24 = vsel %vm1532_vm6, %v2257_v42, %v1229_v32 }
  0xec   : > { %v1523_v26 = vpop.permute.xlu0 %1522 }
  0xed   : > { %v1231_v28 = vpop.permute.xlu1 %1230  ;;  %v1667_v31 = vsel %vm1659_vm14, %v1650_v37, %v1523_v26 }
  0xee   : > { %2450 = vmatmul.mubr.msk.bf16.gmra.mrb[4].mxu0 %vm1696_vm15, %v1667_v31  ;;  %v1550_v58 = vsel %vm1532_vm6, %v2258_v49, %v1231_v28 }
  0xf0   : > { %v1269_v34 = vpop.permute.xlu0 %1268 }
  0xf1   : > { %v1271_v33 = vpop.permute.xlu1 %1270  ;;  %v1567_v60 = vsel %vm1557_vm7, %v1547_v24, %v1269_v34 }
  0xf2   : > { %v1569_v63 = vsel %vm1557_vm7, %v1550_v58, %v1271_v33 }
  0xf4   : > { %v1317_v48 = vpop.permute.xlu0 %1316 }
  0xf5   : > { %v1319_v54 = vpop.permute.xlu1 %1318  ;;  %v1584_v57 = vsel %vm1574_vm8, %v1567_v60, %v1317_v48 }
  0xf6   : > { %v1586_v52 = vsel %vm1574_vm8, %v1569_v63, %v1319_v54 }
  0xf9   : > { %v1359_v25 = vpop.permute.xlu1 %1358 }
  0xfa   : > { %v1357_v55 = vpop.permute.xlu0 %1356  ;;  %v1603_v62 = vsel %vm1591_vm9, %v1586_v52, %v1359_v25 }
  0xfb   : > { %v1601_v17 = vsel %vm1591_vm9, %v1584_v57, %v1357_v55 }
  0xfd   : > { %v1399_v6 = vpop.permute.xlu1 %1398 }
  0xfe   : > { %v1397_v19 = vpop.permute.xlu0 %1396  ;;  %v1620_v51 = vsel %vm1608_vm10, %v1603_v62, %v1399_v6 }
  0xff   : > { %v1618_v59 = vsel %vm1608_vm10, %v1601_v17, %v1397_v19 }
 0x101   : > { %v1447_v46 = vpop.permute.xlu1 %1446 }
 0x102   : > { %v1445_v43 = vpop.permute.xlu0 %1444  ;;  %v1637_v53 = vsel %vm1625_vm11, %v1620_v51, %v1447_v46 }
 0x103   : > { %v1635_v22 = vsel %vm1625_vm11, %v1618_v59, %v1445_v43 }
 0x106   : > { %v1487_v44 = vpop.permute.xlu1 %1486 }
 0x107   : > { %v1485_v50 = vpop.permute.xlu0 %1484  ;;  %v1654_v35 = vsel %vm1642_vm13, %v1637_v53, %v1487_v44 }
 0x108   : > { %v1652_v61 = vsel %vm1642_vm13, %v1635_v22, %v1485_v50 }
 0x10b   : > { %v1525_v5 = vpop.permute.xlu0 %1524 }
 0x10c   : > { %v1233_v45 = vpop.permute.xlu1 %1232  ;;  %v1669_v2 = vsel %vm1659_vm14, %v1652_v61, %v1525_v5 }
 0x10d   : > { %2453 = vmatprep.mubr.msk.bf16.mxu1 %vm1696_vm15, %v1669_v2  ;;  %v1553_v7 = vsel %vm1532_vm6, %v2259_v0, %v1233_v45 }
 0x111   : > { %v1527_v8 = vpop.permute.xlu0 %1526 }
 0x112   : > { %v1235_v41 = vpop.permute.xlu1 %1234  ;;  %v1671_v10 = vsel %vm1659_vm14, %v1654_v35, %v1527_v8 }
 0x113   : > { %2454 = vmatmul.mubr.msk.bf16.vlgmr.msra.gmra.mrb[0].mxu1 %vm1696_vm15, %v1671_v10  ;;  %v1556_v13 = vsel %vm1532_vm6, %v2260_v36, %v1235_v41 }
 0x115   : > { %v1273_v11 = vpop.permute.xlu0 %1272 }
 0x116   : > { %v1275_v12 = vpop.permute.xlu1 %1274  ;;  %v1571_v40 = vsel %vm1557_vm7, %v1553_v7, %v1273_v11 }
 0x117   : > { %v1573_v32 = vsel %vm1557_vm7, %v1556_v13, %v1275_v12 }
 0x119   : > { %v1321_v14 = vpop.permute.xlu0 %1320 }
 0x11a   : > { %v1323_v4 = vpop.permute.xlu1 %1322  ;;  %v1588_v30 = vsel %vm1574_vm8, %v1571_v40, %v1321_v14 }
 0x11b   : > { %v1590_v23 = vsel %vm1574_vm8, %v1573_v32, %v1323_v4 }
 0x11e   : > { %v1363_v1 = vpop.permute.xlu1 %1362 }
 0x11f   : > { %v1361_v3 = vpop.permute.xlu0 %1360  ;;  %v1607_v39 = vsel %vm1591_vm9, %v1590_v23, %v1363_v1 }
 0x120   : > { %v1605_v21 = vsel %vm1591_vm9, %v1588_v30, %v1361_v3 }
 0x122   : > { %v1403_v18 = vpop.permute.xlu1 %1402 }
 0x123   : > { %v1401_v16 = vpop.permute.xlu0 %1400  ;;  %v1624_v36 = vsel %vm1608_vm10, %v1607_v39, %v1403_v18 }
 0x124   : > { %v1622_v15 = vsel %vm1608_vm10, %v1605_v21, %v1401_v16 }
 0x126   : > { %v1451_v20 = vpop.permute.xlu1 %1450 }
 0x127   : > { %v1449_v27 = vpop.permute.xlu0 %1448  ;;  %v1641_v9 = vsel %vm1625_vm11, %v1624_v36, %v1451_v20 }
 0x128   : > { %v1639_v0 = vsel %vm1625_vm11, %v1622_v15, %v1449_v27 }
 0x12b   : > { %v1491_v29 = vpop.permute.xlu1 %1490 }
 0x12c   : > { %v1489_v47 = vpop.permute.xlu0 %1488  ;;  %v1658_v37 = vsel %vm1642_vm13, %v1641_v9, %v1491_v29 }
 0x12d   : > { %v1656_v28 = vsel %vm1642_vm13, %v1639_v0, %v1489_v47 }
 0x12f   : > { %v1531_v26 = vpop.permute.xlu1 %1530 }
 0x130   : > { %v1675_v31 = vsel %vm1659_vm14, %v1658_v37, %v1531_v26  ;;  %v1529_v34 = vpop.permute.xlu0 %1528 }
 0x131   : > { %v1673_v33 = vsel %vm1659_vm14, %v1656_v28, %v1529_v34 }
 0x132   : > { %2457 = vmatprep.mubr.msk.bf16.mxu1 %vm1696_vm15, %v1673_v33 }
 0x133   : > { %2458 = vmatmul.mubr.msk.bf16.gmra.mrb[4].mxu1 %vm1696_vm15, %v1675_v31 }
 0x19c   : > { %v2447_v48 = vpop.f32.mrb[0].mxu0 }
 0x19d   : > { %v1751_v54 = vpop.f32.mrb[1].mxu0  ;;  %v1912_v46 = vmul.f32 %v2447_v48, %v2447_v48 }
 0x19e   : > { %v2448_v25 = vpop.f32.mrb[2].mxu0  ;;  %v1910_v19 = vmul.f32 %v1751_v54, %v1751_v54 }
 0x19f   : > { %v2389_v55 = vpack.c.bf16 %v2448_v25, %v2447_v48  ;;  %v1754_v6 = vpop.f32.mrb[3].mxu0  ;;  %v1913_v60 = vmul.f32 %v2448_v25, %v2448_v25 }
 0x1a0   : > { %v2384_v56 = vpack.c.bf16 %v1754_v6, %v1751_v54  ;;  %v1894_v38 = vadd.f32 %v1754_v6, %v1751_v54  ;;  %v1911_v42 = vmul.f32 %v1754_v6, %v1754_v6 }
 0x1a1   : > { %2421 = vst [vmem:[%s3597_s6 + $0x8] sm:$0xff] %v2389_v55  }
 0x1a2   : > { %2385 = vst [vmem:[%s3597_s6] sm:$0xff] %v2384_v56   ;;  %v1895_v43 = vadd.f32 %v2447_v48, %v1894_v38  ;;  %v1926_v24 = vadd.f32 %v1911_v42, %v1910_v19 }
 0x1a4   : > { %v1927_v44 = vadd.f32 %v1926_v24, %v1912_v46  ;;  %v1896_v49 = vadd.f32 %v2448_v25, %v1895_v43 }
 0x1a6   : > { %v1928_v57 = vadd.f32 %v1927_v44, %v1913_v60 }
 0x1c1   : > { %v2451_v50 = vpop.f32.mrb[4].mxu0 }
 0x1c2   : > { %v1767_v17 = vpop.f32.mrb[5].mxu0  ;;  %v1916_v62 = vmul.f32 %v2451_v50, %v2451_v50 }
 0x1c3   : > { %v1897_v59 = vadd.f32 %v1896_v49, %v1767_v17  ;;  %v1914_v22 = vmul.f32 %v1767_v17, %v1767_v17  ;;  %v2452_v58 = vpop.f32.mrb[6].mxu0 }
 0x1c4   : > { %v2399_v61 = vpack.c.bf16 %v2452_v58, %v2451_v50  ;;  %v1770_v5 = vpop.f32.mrb[7].mxu0  ;;  %v1917_v35 = vmul.f32 %v2452_v58, %v2452_v58 }
 0x1c5   : > { %v1929_v63 = vadd.f32 %v1928_v57, %v1914_v22  ;;  %v2394_v45 = vpack.c.bf16 %v1770_v5, %v1767_v17  ;;  %v1898_v2 = vadd.f32 %v1897_v59, %v1770_v5  ;;  %v1915_v52 = vmul.f32 %v1770_v5, %v1770_v5 }
 0x1c6   : > { %2423 = vst [vmem:[%s3597_s6 + $0x18] sm:$0xff] %v2399_v61  }
 0x1c7   : > { %2422 = vst [vmem:[%s3597_s6 + $0x10] sm:$0xff] %v2394_v45   ;;  %v1899_v51 = vadd.f32 %v2451_v50, %v1898_v2  ;;  %v1930_v53 = vadd.f32 %v1929_v63, %v1915_v52 }
 0x1c9   : > { %v1931_v8 = vadd.f32 %v1930_v53, %v1916_v62  ;;  %v1900_v41 = vadd.f32 %v2452_v58, %v1899_v51 }
 0x1cb   : > { %v1932_v10 = vadd.f32 %v1931_v8, %v1917_v35 }
 0x1e6   : > { %v2455_v11 = vpop.f32.mrb[0].mxu1 }
 0x1e7   : > { %v1783_v12 = vpop.f32.mrb[1].mxu1  ;;  %v1920_v7 = vmul.f32 %v2455_v11, %v2455_v11 }
 0x1e8   : > { %v1901_v14 = vadd.f32 %v1900_v41, %v1783_v12  ;;  %v1918_v4 = vmul.f32 %v1783_v12, %v1783_v12  ;;  %v2456_v1 = vpop.f32.mrb[2].mxu1 }
 0x1e9   : > { %v2409_v3 = vpack.c.bf16 %v2456_v1, %v2455_v11  ;;  %v1786_v18 = vpop.f32.mrb[3].mxu1  ;;  %v1921_v23 = vmul.f32 %v2456_v1, %v2456_v1 }
 0x1ea   : > { %v1933_v16 = vadd.f32 %v1932_v10, %v1918_v4  ;;  %v2404_v20 = vpack.c.bf16 %v1786_v18, %v1783_v12  ;;  %v1902_v27 = vadd.f32 %v1901_v14, %v1786_v18  ;;  %v1919_v13 = vmul.f32 %v1786_v18, %v1786_v18 }
 0x1eb   : > { %2425 = vst [vmem:[%s3597_s6 + $0x28] sm:$0xff] %v2409_v3  }
 0x1ec   : > { %2424 = vst [vmem:[%s3597_s6 + $0x20] sm:$0xff] %v2404_v20   ;;  %v1903_v32 = vadd.f32 %v2455_v11, %v1902_v27  ;;  %v1934_v40 = vadd.f32 %v1933_v16, %v1919_v13 }
 0x1ee   : > { %v1935_v29 = vadd.f32 %v1934_v40, %v1920_v7  ;;  %v1904_v30 = vadd.f32 %v2456_v1, %v1903_v32 }
 0x1f0   : > { %v1936_v39 = vadd.f32 %v1935_v29, %v1921_v23 }
 0x206   : > { %v2459_v47 = vpop.f32.mrb[4].mxu1 }
 0x207   : > { %v1799_v21 = vpop.f32.mrb[5].mxu1  ;;  %v1924_v33 = vmul.f32 %v2459_v47, %v2459_v47 }
 0x208   : > { %v1905_v36 = vadd.f32 %v1904_v30, %v1799_v21  ;;  %v1922_v15 = vmul.f32 %v1799_v21, %v1799_v21  ;;  %v2460_v9 = vpop.f32.mrb[6].mxu1 }
 0x209   : > { %v2419_v0 = vpack.c.bf16 %v2460_v9, %v2459_v47  ;;  %v1802_v37 = vpop.f32.mrb[7].mxu1 }
 0x20a   : > { %v1937_v26 = vadd.f32 %v1936_v39, %v1922_v15  ;;  %v2414_v28 = vpack.c.bf16 %v1802_v37, %v1799_v21  ;;  %v1906_v31 = vadd.f32 %v1905_v36, %v1802_v37  ;;  %v1923_v34 = vmul.f32 %v1802_v37, %v1802_v37 }
 0x20b   : > { %2427 = vst [vmem:[%s3597_s6 + $0x38] sm:$0xff] %v2419_v0  }
 0x20c   : > { %2426 = vst [vmem:[%s3597_s6 + $0x30] sm:$0xff] %v2414_v28   ;;  %v1907_v48 = vadd.f32 %v2459_v47, %v1906_v31  ;;  %v1938_v54 = vadd.f32 %v1937_v26, %v1923_v34 }
 0x20d   : > { %2610 = shalt.err (!%p2607_p6)
}
 0x20e   : > { %s2611_s6 = scalar_lea.hbm %s3622_s18, 1024  ;;  %s2615_s30 = scalar_lea.hbm %s3761_s2, 4096 }
 0x20f   : > { %p2612_p7 = scmp.ne.s32.totalorder %s3622_s18, %s2611_s6  ;;  %p2616_p11 = scmp.lt.u32.totalorder %s3622_s18, %s3761_s2 }
 0x210   : > { %p2617_p12 = scmp.lt.u32.totalorder %s2615_s30, %s2611_s6  ;;  %p2619_p0 = scmp.lt.u32.totalorder %s2611_s6, %s3622_s18 }
 0x211   : > { %p2613_p9 = pnand %p2612_p7, %p2843_p3 }
 0x212   : > { %p2618_p13 = por %p2617_p12, %p2616_p11 }
 0x213   : > { %p2614_p10 = pneg %p2613_p9 }
 0x214   : > { %p2620_p1 = por %p2619_p0, %p2618_p13 }
 0x216   : > { %p2621_p2 = pnand %p2620_p1, %p2614_p10 }
 0x218   : > { %2624 = shalt.err (!%p2621_p2)
}
 0x219   : > { %s2762_s1 = smov 64   ;;  %s3776_s11 = smov 4   ;;  %v1925_v25 = vmul.f32 %v2460_v9, %v2460_v9  ;;  %v1939_v55 = vadd.f32 %v1938_v54, %v1924_v33  ;;  %v1908_v6 = vadd.f32 %v2460_v9, %v1907_v48 }
 0x21a   : > { %2470 = dma.vmem_to_hbm [thread:$0]  (%p2843_p3), %s3617_s27, 1024, %s3622_s18, %s1943_s0, %s2762_s1, %s2762_s1, %s3776_s11  }
 0x21b   : > { %s3663_s6 = scalar_lea.hbm %s3762_s3, %s2359_s12  ;;  %s3777_s14 = sshll.u32 %s3626_s9, 4  ;;  %1909 = vst [vmem:[%s3626_s9] sm:$0xff] %v1908_v6  ;;  %v1940_v19 = vadd.f32 %v1939_v55, %v1925_v25  ;;  %s3667_s14 = int_to_ptr.vmem [resolvable:$true] %s3777_s14 }
 0x21c   : > { %s3675_s0 = scalar_lea.hbm %s3763_s4, %s2359_s12  ;;  %s3778_s27 = sshll.u32 %s3630_s10, 4  ;;  %s3679_s27 = int_to_ptr.vmem [resolvable:$true] %s3778_s27 }
 0x21d   : > { %s1948_s18 = scalar_lea.sflag [#allocation5], %s3615_s24  ;;  %s2625_s19 = scalar_lea.vmem %s3667_s14, 128 }
 0x21e   : > { %p2626_p4 = scmp.ne.s32.totalorder %s3667_s14, %s2625_s19  ;;  %s2763_s1 = smov [#allocation4]  }
 0x21f   : > { %s2629_s11 = sshll.u32 %s2763_s1, 4  ;;  %s2630_s11 = int_to_ptr.vmem [resolvable:$false] %s2629_s11 }
 0x220   : > { %p2627_p5 = pnand %p2626_p4, %p2843_p3  ;;  %s2631_s9 = scalar_lea.vmem %s2630_s11, 256 }
 0x221   : > { %p2632_p7 = scmp.lt.s32.totalorder %s3667_s14, %s2630_s11  ;;  %p2633_p9 = scmp.lt.s32.totalorder %s2631_s9, %s2625_s19 }
 0x222   : > { %p2628_p6 = pneg %p2627_p5 }
 0x223   : > { %p2634_p10 = por %p2633_p9, %p2632_p7 }
 0x225   : > { %p2635_p11 = pnand %p2634_p10, %p2628_p6 }
 0x227   : > { %2638 = shalt.err (!%p2635_p11)
}
 0x228   : > { %s2639_s5 = scalar_lea.hbm %s3663_s6, 128  ;;  %s2643_s23 = scalar_lea.hbm %s3762_s3, 512 }
 0x229   : > { %p2640_p12 = scmp.ne.s32.totalorder %s3663_s6, %s2639_s5  ;;  %p2644_p1 = scmp.lt.u32.totalorder %s3663_s6, %s3762_s3 }
 0x22a   : > { %p2645_p2 = scmp.lt.u32.totalorder %s2643_s23, %s2639_s5  ;;  %p2647_p5 = scmp.lt.u32.totalorder %s2639_s5, %s3663_s6 }
 0x22b   : > { %p2641_p13 = pnand %p2640_p12, %p2843_p3 }
 0x22c   : > { %p2646_p4 = por %p2645_p2, %p2644_p1 }
 0x22d   : > { %p2642_p0 = pneg %p2641_p13 }
 0x22e   : > { %p2648_p6 = por %p2647_p5, %p2646_p4 }
 0x230   : > { %p2649_p7 = pnand %p2648_p6, %p2642_p0 }
 0x232   : > { %2652 = shalt.err (!%p2649_p7)
}
 0x233   : > { %2471 = dma.vmem_to_hbm [thread:$0]  (%p2843_p3), %s3667_s14, 128, %s3663_s6, %s1948_s18   ;;  %1941 = vst [vmem:[%s3630_s10] sm:$0xff] %v1940_v19 }
 0x234   : > { %s2653_s19 = scalar_lea.vmem %s3679_s27, 128  ;;  %s2764_s1 = smov [#allocation6]  }
 0x235   : > { %p2654_p9 = scmp.ne.s32.totalorder %s3679_s27, %s2653_s19  ;;  %s2657_s11 = sshll.u32 %s2764_s1, 4  ;;  %s2658_s11 = int_to_ptr.vmem [resolvable:$false] %s2657_s11 }
 0x236   : > { %s2659_s9 = scalar_lea.vmem %s2658_s11, 256  ;;  %p2660_p12 = scmp.lt.s32.totalorder %s3679_s27, %s2658_s11 }
 0x237   : > { %p2655_p10 = pnand %p2654_p9, %p2843_p3  ;;  %p2661_p13 = scmp.lt.s32.totalorder %s2659_s9, %s2653_s19 }
 0x239   : > { %p2656_p11 = pneg %p2655_p10  ;;  %p2662_p0 = por %p2661_p13, %p2660_p12 }
 0x23b   : > { %p2663_p1 = pnand %p2662_p0, %p2656_p11 }
 0x23d   : > { %2666 = shalt.err (!%p2663_p1)
}
 0x23e   : > { %s2667_s10 = scalar_lea.hbm %s3675_s0, 128  ;;  %s2671_s5 = scalar_lea.hbm %s3763_s4, 512 }
 0x23f   : > { %p2668_p2 = scmp.ne.s32.totalorder %s3675_s0, %s2667_s10  ;;  %p2672_p6 = scmp.lt.u32.totalorder %s3675_s0, %s3763_s4 }
 0x240   : > { %p2673_p7 = scmp.lt.u32.totalorder %s2671_s5, %s2667_s10  ;;  %p2675_p10 = scmp.lt.u32.totalorder %s2667_s10, %s3675_s0 }
 0x241   : > { %p2669_p4 = pnand %p2668_p2, %p2843_p3 }
 0x242   : > { %p2674_p9 = por %p2673_p7, %p2672_p6 }
 0x243   : > { %p2670_p5 = pneg %p2669_p4 }
 0x244   : > { %p2676_p11 = por %p2675_p10, %p2674_p9 }
 0x246   : > { %p2677_p12 = pnand %p2676_p11, %p2670_p5 }
 0x248   : > { %2680 = shalt.err (!%p2677_p12)
}
 0x249   : > { %2472 = dma.vmem_to_hbm [thread:$0]  (%p2843_p3), %s3679_s27, 128, %s3675_s0, %s1948_s18  }
 0x24a PF: > { %p2486_p13 = scmp.ge.s32.totalorder %s2751_s22, 2  ;;  %s2013_s23 = sand.u32 1, %s2723_s15  }
 0x24b   : > { %s2014_s13 = scalar_lea.sflag [#allocation3], %s2013_s23 }
 0x24c   : > { %p2477_p0 = pnand %p2486_p13, %p2854_p8 }
 0x24e   : > { %2714 = dma.done.wait (!%p2477_p0), %s2014_s13, 1024  }
 0x24f   : > { %2716 = vsyncadd (!%p2477_p0), %s2014_s13, 4294966272  ;;  %s3779_s30 = sadd.s32 4294967294, %s2751_s22  }
 0x250   : > { %s2022_s19 = sand.u32 1, %s3779_s30  }
 0x251   : > { %s2023_s28 = scalar_lea.sflag [#allocation5], %s2022_s19 }
 0x252   : > { %2718 = dma.done.wait (!%p2477_p0), %s2023_s28, 256  }
 0x253   : > { %2720 = vsyncadd (!%p2477_p0), %s2023_s28, 4294967040  ;;  %s21_s22 = sadd.s32 1, %s2751_s22   ;;  %s3780_s15 = smov %s2727_s16 }
 0x254   : > { %p18_p3 = scmp.ge.s32.totalorder %s21_s22, 6   ;;  %s3781_s16 = smov %s2731_s17 }
 0x255   : > { %s3782_s17 = smov %s2863_s7  ;;  %s3783_s18 = smov %s2743_s20 }
 0x256   : > { %s3784_s19 = smov %s2747_s21  ;;  %s3785_s20 = smov %s3788_s25 }
 0x257   : > { %s3786_s21 = smov %s3792_s26  ;;  %20 = sbr.rel (!%p18_p3) target bundleno = 10 (0xa), region = 98 }
 0x25e   :  { %2037 = vsyncpa [#allocation3], 1 }
 0x25f   :  { %2039 = vsyncpa [#allocation3 + $0x1], 1 }
 0x260   :  { %2040 = vsyncpa [#allocation5], 1 }
 0x261   :  { %2042 = vsyncpa [#allocation5 + $0x1], 1 }

</bundles_post_ra>
